<compile_context>
chip_gen: v7x
topology: tpu7x:2x2x1
jax: 0.10.0
libtpu: 0.0.40
codegen_flags: <defaults>
</compile_context>

<pallas_src>
import jax
import jax.numpy as jnp
from jax.experimental import pallas as pl
from jax.experimental.pallas import tpu as pltpu


def _round_up(x, m):
    return ((x + m - 1) // m) * m


def _make_qnetwork_kernel(layer_dims, col_offs):
    """Build the kernel body for a fixed (static) set of layer shapes.

    layer_dims: tuple of (in_dim, out_dim) per layer.
    col_offs:   static column offset of each layer's weight inside the packed
                weight buffer (all multiples of 128 -> lane-aligned slices).
    """
    n_layers = len(layer_dims)

    def kernel(x_ref, w_ref, b_ref, out_ref):
        # bf16 operands feed the MXU; f32 accumulation via preferred_element_type.
        h = x_ref[...].astype(jnp.bfloat16)
        for i in range(n_layers):
            in_dim, out_dim = layer_dims[i]
            off = col_offs[i]
            w = w_ref[:in_dim, off:off + out_dim]     # static, lane-aligned slice
            y = jnp.dot(h, w, preferred_element_type=jnp.float32)
            y = y + b_ref[i:i + 1, :out_dim]          # (1, out) f32 bias broadcast
            if i < n_layers - 1:
                # ReLU in f32 (v5e-safe), store inter-layer activation in bf16.
                h = jnp.maximum(y, 0.0).astype(jnp.bfloat16)
            else:
                out_ref[...] = y.astype(out_ref.dtype)

    return kernel


def pack_qnetwork_params(params, num_layers=6):
    """Pack per-layer bf16 weights / f32 biases into two contiguous buffers.

    Weight i occupies w_packed[:in_i, off_i:off_i+out_i] with off_i a multiple
    of 128; bias i occupies b_packed[i, :out_i]. Done once, outside the kernel.
    """
    dims = tuple(params[f"w{i + 1}"].shape for i in range(num_layers))
    col_widths = [_round_up(d[1], 128) for d in dims]
    col_offs = []
    acc = 0
    for w in col_widths:
        col_offs.append(acc)
        acc += w
    total_cols = acc
    max_in = max(d[0] for d in dims)
    max_out = max(col_widths)

    w_packed = jnp.zeros((max_in, total_cols), jnp.bfloat16)
    b_packed = jnp.zeros((num_layers, max_out), jnp.float32)
    for i in range(num_layers):
        in_dim, out_dim = dims[i]
        off = col_offs[i]
        w_packed = w_packed.at[:in_dim, off:off + out_dim].set(params[f"w{i + 1}"])
        b_packed = b_packed.at[i, :out_dim].set(params[f"b{i + 1}"].reshape(-1))

    return {
        "w_packed": w_packed,
        "b_packed": b_packed,
        "dims": dims,
        "col_offs": tuple(col_offs),
    }


def qnetwork_forward(state, packed, *, block_m=512):
    """Pallas forward pass: batch streamed over a parallel grid, weights resident."""
    batch, state_size = state.shape
    dims = packed["dims"]
    col_offs = packed["col_offs"]
    action_size = dims[-1][1]
    w_packed = packed["w_packed"]
    b_packed = packed["b_packed"]

    # Row tiling: large tiles amortize the ~0.35 us/step grid overhead, but use
    # at least 2 grid steps once there is enough work so both v7x TensorCores
    # get a tile (dimension_semantics="parallel" shards the grid across TCs).
    padded0 = _round_up(batch, 8)
    ntiles = pl.cdiv(padded0, block_m)
    if padded0 >= 256:
        ntiles = max(ntiles, 2)
    bm = _round_up(pl.cdiv(padded0, ntiles), 8)
    padded = ntiles * bm

    x = state
    if padded != batch:
        x = jnp.pad(state, ((0, padded - batch), (0, 0)))

    kernel = _make_qnetwork_kernel(dims, col_offs)

    out = pl.pallas_call(
        kernel,
        out_shape=jax.ShapeDtypeStruct((padded, action_size), jnp.float32),
        grid=(ntiles,),
        in_specs=[
            pl.BlockSpec((bm, state_size), lambda i: (i, 0)),
            # Constant index_map -> packed weights/biases DMA'd once, VMEM-resident.
            pl.BlockSpec(w_packed.shape, lambda i: (0, 0)),
            pl.BlockSpec(b_packed.shape, lambda i: (0, 0)),
        ],
        out_specs=pl.BlockSpec((bm, action_size), lambda i: (i, 0)),
        compiler_params=pltpu.CompilerParams(
            dimension_semantics=("parallel",),
            # Actual VMEM use is ~6-7 MiB; 32 MiB mainly lifts v5e's 16 MiB default.
            vmem_limit_bytes=32 << 20,
        ),
    )(x, w_packed, b_packed)

    return out[:batch]


def init_qnetwork_params(key, state_size, action_size,
                         fc1_units=512, fc2_units=512, fc3_units=512,
                         fc4_units=256, fc5_units=256):
    """PyTorch nn.Linear-style init: U(-1/sqrt(fan_in), 1/sqrt(fan_in)).
    Weights stored as (in_features, out_features) in bfloat16 (MXU operands);
    biases kept in float32."""
    dims = [state_size, fc1_units, fc2_units, fc3_units,
            fc4_units, fc5_units, action_size]
    params = {}
    for i in range(6):
        fan_in, fan_out = dims[i], dims[i + 1]
        key, kw, kb = jax.random.split(key, 3)
        bound = 1.0 / jnp.sqrt(jnp.float32(fan_in))
        w = jax.random.uniform(kw, (fan_in, fan_out), jnp.float32, -bound, bound)
        b = jax.random.uniform(kb, (1, fan_out), jnp.float32, -bound, bound)
        params[f"w{i + 1}"] = w.astype(jnp.bfloat16)
        params[f"b{i + 1}"] = b
    return params


def qnetwork_ref(state, params):
    """Pure-JAX reference with the same numerics as the kernel:
    bf16 matmul operands, f32 accumulation, f32 bias/ReLU, bf16 activations."""
    # TODO(synk): bf16 weights/activations do not bit-match an f32 PyTorch
    # nn.Linear stack; keep an f32-weight path if exact parity is required.
    h = state.astype(jnp.bfloat16)
    for i in range(1, 7):
        w = params[f"w{i}"]
        b = params[f"b{i}"]
        y = jnp.dot(h, w, preferred_element_type=jnp.float32) + b
        if i < 6:
            h = jnp.maximum(y, 0.0).astype(jnp.bfloat16)
        else:
            return y


if __name__ == "__main__":
    key = jax.random.PRNGKey(0)
    k_params, k_state = jax.random.split(key)

    batch = 8
    state_size = 16
    action_size = 4

    params = init_qnetwork_params(k_params, state_size, action_size)
    packed = pack_qnetwork_params(params)
    state = jax.random.normal(k_state, (batch, state_size), jnp.float32)

    out = qnetwork_forward(state, packed)
    out = jax.block_until_ready(out)

    ref = qnetwork_ref(state, params)
    assert out.shape == (batch, action_size)
    assert jnp.allclose(out, ref, atol=2e-2, rtol=2e-2), (
        f"max abs err = {jnp.max(jnp.abs(out - ref))}")

    print("KERNEL_OK")
</pallas_src>

<mosaic_0001>
module attributes {stable_mosaic.version = 11 : i64} {
  func.func @kernel(%arg0: i32, %arg1: memref<8x16xf32, #tpu.memory_space<vmem>>, %arg2: memref<512x2176xbf16, #tpu.memory_space<vmem>>, %arg3: memref<6x512xf32, #tpu.memory_space<vmem>>, %arg4: memref<8x4xf32, #tpu.memory_space<vmem>>) attributes {dimension_semantics = [#tpu.dimension_semantics<parallel>], iteration_bounds = array<i64: 1>, scalar_prefetch = 0 : i64, scratch_operands = 0 : i64, tpu.core_type = #tpu.core_type<tc>, window_params = [{transform_indices = @transform_0, window_bounds = array<i64: 8, 16>}, {pipeline_mode = #tpu.pipeline_mode<synchronous>, transform_indices = @transform_1, window_bounds = array<i64: 512, 2176>}, {pipeline_mode = #tpu.pipeline_mode<synchronous>, transform_indices = @transform_2, window_bounds = array<i64: 6, 512>}, {transform_indices = @transform_3, window_bounds = array<i64: 8, 4>}]} {
    %c0 = arith.constant 0 : index
    %c0_0 = arith.constant 0 : index
    %0 = vector.load %arg1[%c0, %c0_0] : memref<8x16xf32, #tpu.memory_space<vmem>>, vector<8x16xf32>
    %1 = arith.truncf %0 : vector<8x16xf32> to vector<8x16xbf16>
    %c0_1 = arith.constant 0 : index
    %c0_2 = arith.constant 0 : index
    %2 = vector.load %arg2[%c0_1, %c0_2] : memref<512x2176xbf16, #tpu.memory_space<vmem>>, vector<16x512xbf16>
    %cst = arith.constant dense<0.000000e+00> : vector<8x512xf32>
    %3 = tpu.matmul %1, %2, %cst {dimension_numbers = #tpu.dot_dimension_numbers<[1], [0], [0], [1], [0, 0, 1, 1], [], []>} : vector<8x16xbf16>, vector<16x512xbf16>, vector<8x512xf32> -> vector<8x512xf32>
    %c0_3 = arith.constant 0 : index
    %c0_4 = arith.constant 0 : index
    %4 = vector.load %arg3[%c0_3, %c0_4] : memref<6x512xf32, #tpu.memory_space<vmem>>, vector<1x512xf32>
    %5 = vector.broadcast %4 : vector<1x512xf32> to vector<8x512xf32>
    %6 = arith.addf %3, %5 : vector<8x512xf32>
    %cst_5 = arith.constant 0.000000e+00 : f32
    %7 = vector.broadcast %cst_5 : f32 to vector<8x512xf32>
    %8 = arith.maximumf %6, %7 : vector<8x512xf32>
    %9 = arith.truncf %8 : vector<8x512xf32> to vector<8x512xbf16>
    %c0_6 = arith.constant 0 : index
    %c512 = arith.constant 512 : index
    %10 = vector.load %arg2[%c0_6, %c512] : memref<512x2176xbf16, #tpu.memory_space<vmem>>, vector<512x512xbf16>
    %cst_7 = arith.constant dense<0.000000e+00> : vector<8x512xf32>
    %11 = tpu.matmul %9, %10, %cst_7 {dimension_numbers = #tpu.dot_dimension_numbers<[1], [0], [0], [1], [0, 0, 1, 1], [], []>} : vector<8x512xbf16>, vector<512x512xbf16>, vector<8x512xf32> -> vector<8x512xf32>
    %c1 = arith.constant 1 : index
    %c0_8 = arith.constant 0 : index
    %12 = vector.load %arg3[%c1, %c0_8] : memref<6x512xf32, #tpu.memory_space<vmem>>, vector<1x512xf32>
    %13 = vector.broadcast %12 : vector<1x512xf32> to vector<8x512xf32>
    %14 = arith.addf %11, %13 : vector<8x512xf32>
    %cst_9 = arith.constant 0.000000e+00 : f32
    %15 = vector.broadcast %cst_9 : f32 to vector<8x512xf32>
    %16 = arith.maximumf %14, %15 : vector<8x512xf32>
    %17 = arith.truncf %16 : vector<8x512xf32> to vector<8x512xbf16>
    %c0_10 = arith.constant 0 : index
    %c1024 = arith.constant 1024 : index
    %18 = vector.load %arg2[%c0_10, %c1024] : memref<512x2176xbf16, #tpu.memory_space<vmem>>, vector<512x512xbf16>
    %cst_11 = arith.constant dense<0.000000e+00> : vector<8x512xf32>
    %19 = tpu.matmul %17, %18, %cst_11 {dimension_numbers = #tpu.dot_dimension_numbers<[1], [0], [0], [1], [0, 0, 1, 1], [], []>} : vector<8x512xbf16>, vector<512x512xbf16>, vector<8x512xf32> -> vector<8x512xf32>
    %c2 = arith.constant 2 : index
    %c0_12 = arith.constant 0 : index
    %20 = vector.load %arg3[%c2, %c0_12] : memref<6x512xf32, #tpu.memory_space<vmem>>, vector<1x512xf32>
    %21 = vector.broadcast %20 : vector<1x512xf32> to vector<8x512xf32>
    %22 = arith.addf %19, %21 : vector<8x512xf32>
    %cst_13 = arith.constant 0.000000e+00 : f32
    %23 = vector.broadcast %cst_13 : f32 to vector<8x512xf32>
    %24 = arith.maximumf %22, %23 : vector<8x512xf32>
    %25 = arith.truncf %24 : vector<8x512xf32> to vector<8x512xbf16>
    %c0_14 = arith.constant 0 : index
    %c1536 = arith.constant 1536 : index
    %26 = vector.load %arg2[%c0_14, %c1536] : memref<512x2176xbf16, #tpu.memory_space<vmem>>, vector<512x256xbf16>
    %cst_15 = arith.constant dense<0.000000e+00> : vector<8x256xf32>
    %27 = tpu.matmul %25, %26, %cst_15 {dimension_numbers = #tpu.dot_dimension_numbers<[1], [0], [0], [1], [0, 0, 1, 1], [], []>} : vector<8x512xbf16>, vector<512x256xbf16>, vector<8x256xf32> -> vector<8x256xf32>
    %c3 = arith.constant 3 : index
    %c0_16 = arith.constant 0 : index
    %28 = vector.load %arg3[%c3, %c0_16] : memref<6x512xf32, #tpu.memory_space<vmem>>, vector<1x256xf32>
    %29 = vector.broadcast %28 : vector<1x256xf32> to vector<8x256xf32>
    %30 = arith.addf %27, %29 : vector<8x256xf32>
    %cst_17 = arith.constant 0.000000e+00 : f32
    %31 = vector.broadcast %cst_17 : f32 to vector<8x256xf32>
    %32 = arith.maximumf %30, %31 : vector<8x256xf32>
    %33 = arith.truncf %32 : vector<8x256xf32> to vector<8x256xbf16>
    %c0_18 = arith.constant 0 : index
    %c1792 = arith.constant 1792 : index
    %34 = vector.load %arg2[%c0_18, %c1792] : memref<512x2176xbf16, #tpu.memory_space<vmem>>, vector<256x256xbf16>
    %cst_19 = arith.constant dense<0.000000e+00> : vector<8x256xf32>
    %35 = tpu.matmul %33, %34, %cst_19 {dimension_numbers = #tpu.dot_dimension_numbers<[1], [0], [0], [1], [0, 0, 1, 1], [], []>} : vector<8x256xbf16>, vector<256x256xbf16>, vector<8x256xf32> -> vector<8x256xf32>
    %c4 = arith.constant 4 : index
    %c0_20 = arith.constant 0 : index
    %36 = vector.load %arg3[%c4, %c0_20] : memref<6x512xf32, #tpu.memory_space<vmem>>, vector<1x256xf32>
    %37 = vector.broadcast %36 : vector<1x256xf32> to vector<8x256xf32>
    %38 = arith.addf %35, %37 : vector<8x256xf32>
    %cst_21 = arith.constant 0.000000e+00 : f32
    %39 = vector.broadcast %cst_21 : f32 to vector<8x256xf32>
    %40 = arith.maximumf %38, %39 : vector<8x256xf32>
    %41 = arith.truncf %40 : vector<8x256xf32> to vector<8x256xbf16>
    %c0_22 = arith.constant 0 : index
    %c2048 = arith.constant 2048 : index
    %42 = vector.load %arg2[%c0_22, %c2048] : memref<512x2176xbf16, #tpu.memory_space<vmem>>, vector<256x4xbf16>
    %cst_23 = arith.constant dense<0.000000e+00> : vector<8x4xf32>
    %43 = tpu.matmul %41, %42, %cst_23 {dimension_numbers = #tpu.dot_dimension_numbers<[1], [0], [0], [1], [0, 0, 1, 1], [], []>} : vector<8x256xbf16>, vector<256x4xbf16>, vector<8x4xf32> -> vector<8x4xf32>
    %c5 = arith.constant 5 : index
    %c0_24 = arith.constant 0 : index
    %44 = vector.load %arg3[%c5, %c0_24] : memref<6x512xf32, #tpu.memory_space<vmem>>, vector<1x4xf32>
    %45 = vector.broadcast %44 : vector<1x4xf32> to vector<8x4xf32>
    %46 = arith.addf %43, %45 : vector<8x4xf32>
    %c0_25 = arith.constant 0 : index
    %c0_26 = arith.constant 0 : index
    %47 = vector.load %arg4[%c0_25, %c0_26] : memref<8x4xf32, #tpu.memory_space<vmem>>, vector<8x4xf32>
    tpu.vector_store %arg4[%c0_25, %c0_26], %46 {strides = array<i32>} : memref<8x4xf32, #tpu.memory_space<vmem>>, vector<8x4xf32>,
    return
  }
  func.func @transform_0(%arg0: i32) -> (i32, i32) {
    %c0_i32 = arith.constant 0 : i32
    %c0_i32_0 = arith.constant 0 : i32
    return %arg0, %c0_i32 : i32, i32
  }
  func.func @transform_1(%arg0: i32) -> (i32, i32) {
    %c0_i32 = arith.constant 0 : i32
    %c0_i32_0 = arith.constant 0 : i32
    %c0_i32_1 = arith.constant 0 : i32
    return %c0_i32, %c0_i32_0 : i32, i32
  }
  func.func @transform_2(%arg0: i32) -> (i32, i32) {
    %c0_i32 = arith.constant 0 : i32
    %c0_i32_0 = arith.constant 0 : i32
    %c0_i32_1 = arith.constant 0 : i32
    return %c0_i32, %c0_i32_0 : i32, i32
  }
  func.func @transform_3(%arg0: i32) -> (i32, i32) {
    %c0_i32 = arith.constant 0 : i32
    %c0_i32_0 = arith.constant 0 : i32
    return %arg0, %c0_i32 : i32, i32
  }
}

</mosaic_0001>

<bundles_post_ra>
// kernel: tpu_custom_call.1
= control target key start
LH: loop header
LB: loop body
LE: loop exit
PB: predicated region body
PF: predicated region fallthrough
CT: control target
= control target key end

     0   :  { %8 = vsyncpa [#allocation3], 0  ;;  %s4206_s0 = inlined_call_operand.hbm [shape: f32[8,16], index: 0, kind: input, shape index: {}]   ;;  %s4207_s1 = inlined_call_operand.hbm [shape: bf16[512,2176], index: 1, kind: input, shape index: {}]   ;;  %s4208_s2 = inlined_call_operand.hbm [shape: f32[6,512], index: 2, kind: input, shape index: {}]   ;;  %s4209_s3 = inlined_call_operand.vmem [shape: f32[8,4], index: 3, kind: output, shape index: {}]  }
   0x1   :  { %9 = vsyncpa [#allocation5], 0  ;;  %s4082_s12 = smov [#allocation4]   ;;  %s4012_s16 = scalar_lea.hbm %s4207_s1, 69632 }
   0x2   :  { %s25_s13 = sshll.u32 %s4082_s12, 4  ;;  %p4013_p0 = scmp.ne.s32.totalorder %s4207_s1, %s4012_s16  ;;  %s26_s13 = int_to_ptr.vmem [resolvable:$true] %s25_s13 }
   0x3   :  { %p4016_p1 = scmp.lt.u32.totalorder %s4012_s16, %s4207_s1 }
   0x5   :  { %p4018_p2 = pnand %p4016_p1, %p4013_p0 }
   0x7   :  { %4021 = shalt.err (!%p4018_p2)
}
   0x8   :  { %s4022_s21 = scalar_lea.vmem %s26_s13, 69632  ;;  %p4027_p4 = scmp.lt.s32.totalorder %s26_s13, %s26_s13 }
   0x9   :  { %p4023_p3 = scmp.ne.s32.totalorder %s26_s13, %s4022_s21  ;;  %p4028_p5 = scmp.lt.s32.totalorder %s4022_s21, %s4022_s21 }
   0xb   :  { %p4029_p6 = por %p4028_p5, %p4027_p4 }
   0xd   :  { %p4030_p7 = pnand %p4029_p6, %p4023_p3 }
   0xf   :  { %4033 = shalt.err (!%p4030_p7)
}
  0x10   :  { %s4083_s22 = smov 1088   ;;  %s4084_s23 = smov 68  }
  0x11   :  { %31 = dma.hbm_to_vmem [thread:$0]  %s4207_s1, 69632, %s26_s13, [#allocation5], %s4083_s22, %s4083_s22, %s4084_s23  }
  0x12   :  { %s4085_s26 = smov [#allocation2]   ;;  %s4086_s28 = smov [#allocation6]  }
  0x13   :  { %s16_s27 = sshll.u32 %s4085_s26, 4  ;;  %s38_s29 = sshll.u32 %s4086_s28, 4  ;;  %s17_s27 = int_to_ptr.vmem [resolvable:$true] %s16_s27  ;;  %s39_s29 = int_to_ptr.vmem [resolvable:$true] %s38_s29 }
  0x14   :  { %s4034_s5 = scalar_lea.hbm %s4206_s0, 128 }
  0x15   :  { %p4035_p8 = scmp.ne.s32.totalorder %s4206_s0, %s4034_s5  ;;  %p4038_p9 = scmp.lt.u32.totalorder %s4034_s5, %s4206_s0 }
  0x17   :  { %p4040_p10 = pnand %p4038_p9, %p4035_p8 }
  0x19   :  { %4043 = shalt.err (!%p4040_p10)
}
  0x1a   :  { %s4044_s1 = scalar_lea.vmem %s17_s27, 128  ;;  %p4049_p12 = scmp.lt.s32.totalorder %s17_s27, %s17_s27 }
  0x1b   :  { %p4045_p11 = scmp.ne.s32.totalorder %s17_s27, %s4044_s1  ;;  %p4050_p13 = scmp.lt.s32.totalorder %s4044_s1, %s4044_s1 }
  0x1d   :  { %p4051_p0 = por %p4050_p13, %p4049_p12 }
  0x1f   :  { %p4052_p1 = pnand %p4051_p0, %p4045_p11 }
  0x21   :  { %4055 = shalt.err (!%p4052_p1)
}
  0x22   :  { %19 = dma.hbm_to_vmem [thread:$0]  %s4206_s0, 128, %s17_s27, [#allocation3]  }
  0x23   :  { %s4056_s14 = scalar_lea.hbm %s4208_s2, 512 }
  0x24   :  { %p4057_p2 = scmp.ne.s32.totalorder %s4208_s2, %s4056_s14  ;;  %p4060_p3 = scmp.lt.u32.totalorder %s4056_s14, %s4208_s2 }
  0x26   :  { %p4062_p4 = pnand %p4060_p3, %p4057_p2 }
  0x28   :  { %4065 = shalt.err (!%p4062_p4)
}
  0x29   :  { %s4066_s19 = scalar_lea.vmem %s39_s29, 512  ;;  %p4071_p6 = scmp.lt.s32.totalorder %s39_s29, %s39_s29 }
  0x2a   :  { %p4067_p5 = scmp.ne.s32.totalorder %s39_s29, %s4066_s19  ;;  %p4072_p7 = scmp.lt.s32.totalorder %s4066_s19, %s4066_s19 }
  0x2c   :  { %p4073_p8 = por %p4072_p7, %p4071_p6 }
  0x2e   :  { %p4074_p9 = pnand %p4073_p8, %p4067_p5 }
  0x30   :  { %4077 = shalt.err (!%p4074_p9)
}
  0x31   :  { %41 = dma.hbm_to_vmem [thread:$0]  %s4208_s2, 512, %s39_s29, [#allocation5]  }
  0x32   :  { %4078 = dma.done.wait [#allocation3], 128  }
  0x33   :  { %4079 = vsyncadd [#allocation3], 4294967168 }
  0x34   :  { %4080 = dma.done.wait [#allocation5], 70144  }
  0x35   :  { %4081 = vsyncadd [#allocation5], 4294897152  ;;  %v4087_v0 = vmov 0   ;;  %v3462_v1 = vld [vmem:[#allocation4 + $0x4] ss:$68 sps:$4 sm:$0xff]   ;;  %v52_v3 = vld [vmem:[#allocation2] sm:$0xff] }
  0x36   :  { %136 = vmatprep.mubr.bf16.mxu1 %v4087_v0  ;;  %v3464_v2 = vld [vmem:[#allocation4] ss:$68 sps:$4 sm:$0xff]   ;;  %104 = vmatprep.subr.bf16.mxu1 %v3462_v1  ;;  %v53_v4 = vpack.c.bf16 %v52_v3, %v52_v3  ;;  %v3465_v5 = vld [vmem:[#allocation4 + $0x8] ss:$68 sps:$4 sm:$0xff]   ;;  %vm100_vm0 = vcmask 130048   ;;  %vm3022_vm1 = vcmask 31744  }
  0x37   :  { %v3467_v6 = vld [vmem:[#allocation4 + $0xc] ss:$68 sps:$4 sm:$0xff]   ;;  %105 = vmatpush1.bf16.msra.mxu1 %v3464_v2  ;;  %v3468_v7 = vld [vmem:[#allocation4 + $0x14] ss:$68 sps:$4 sm:$0xff]   ;;  %v3472_v8 = vld [vmem:[#allocation4 + $0x1c] ss:$68 sps:$4 sm:$0xff]  }
  0x38   :  { %145 = vmatprep.subr.bf16.mxu1 %v3467_v6  ;;  %985 = vmatprep.subr.bf16.mxu0 %v3468_v7  ;;  %v3473_v9 = vld [vmem:[#allocation4 + $0x10] ss:$68 sps:$4 sm:$0xff]   ;;  %v3474_v10 = vld [vmem:[#allocation4 + $0x9c] ss:$68 sps:$4 sm:$0xff]   ;;  %v3480_v12 = vld [vmem:[#allocation4 + $0x124] ss:$68 sps:$4 sm:$0xff]  }
  0x39   :  { %986 = vmatpush1.bf16.msra.mxu0 %v3473_v9  ;;  %v3479_v11 = vld [vmem:[#allocation4 + $0x98] ss:$68 sps:$4 sm:$0xff]   ;;  %v3478_v14 = vld [vmem:[#allocation4 + $0xa4] ss:$68 sps:$4 sm:$0xff]   ;;  %v3486_v16 = vld [vmem:[#allocation4 + $0x1ac] ss:$68 sps:$4 sm:$0xff]   ;;  %v60_v9 = vlaneseq }
  0x3a   :  { %3034 = vmatmul.mubr.msk.bf16.vlgmr.msra.gmra.mrb[0].mxu1 %vm100_vm0, %v53_v4  ;;  %987 = vmatprep.subr.bf16.mxu0 %v3474_v10  ;;  %v3470_v13 = vld [vmem:[#allocation4 + $0x18] ss:$68 sps:$4 sm:$0xff]   ;;  %v3485_v15 = vld [vmem:[#allocation4 + $0x120] ss:$68 sps:$4 sm:$0xff]   ;;  %v3484_v18 = vld [vmem:[#allocation4 + $0x12c] ss:$68 sps:$4 sm:$0xff]  }
  0x3b   :  { %146 = vmatpush1.bf16.msra.mxu1 %v3465_v5  ;;  %177 = vmatprep.mubr.bf16.mxu1 %v4087_v0  ;;  %v3476_v17 = vld [vmem:[#allocation4 + $0xa0] ss:$68 sps:$4 sm:$0xff]   ;;  %v3491_v19 = vld [vmem:[#allocation4 + $0x1a8] ss:$68 sps:$4 sm:$0xff]   ;;  %v3492_v20 = vld [vmem:[#allocation4 + $0x234] ss:$68 sps:$4 sm:$0xff]  }
  0x3c   :  { %1067 = vmatprep.subr.bf16.mxu1 %v3472_v8  ;;  %v3482_v21 = vld [vmem:[#allocation4 + $0x128] ss:$68 sps:$4 sm:$0xff]   ;;  %v3490_v22 = vld [vmem:[#allocation4 + $0x1b4] ss:$68 sps:$4 sm:$0xff]   ;;  %v3498_v24 = vld [vmem:[#allocation4 + $0x2bc] ss:$68 sps:$4 sm:$0xff]  }
  0x3d   :  { %988 = vmatpush1.bf16.msra.mxu0 %v3479_v11  ;;  %v3497_v23 = vld [vmem:[#allocation4 + $0x230] ss:$68 sps:$4 sm:$0xff]   ;;  %v3496_v26 = vld [vmem:[#allocation4 + $0x23c] ss:$68 sps:$4 sm:$0xff]   ;;  %v3504_v28 = vld [vmem:[#allocation4 + $0x344] ss:$68 sps:$4 sm:$0xff]  }
  0x3e   :  { %989 = vmatprep.subr.bf16.mxu0 %v3480_v12  ;;  %v3488_v25 = vld [vmem:[#allocation4 + $0x1b0] ss:$68 sps:$4 sm:$0xff]   ;;  %v3503_v27 = vld [vmem:[#allocation4 + $0x2b8] ss:$68 sps:$4 sm:$0xff]   ;;  %v3502_v30 = vld [vmem:[#allocation4 + $0x2c4] ss:$68 sps:$4 sm:$0xff]  }
  0x3f   :  { %v3494_v29 = vld [vmem:[#allocation4 + $0x238] ss:$68 sps:$4 sm:$0xff]   ;;  %v3509_v31 = vld [vmem:[#allocation4 + $0x340] ss:$68 sps:$4 sm:$0xff]   ;;  %v3510_v32 = vld [vmem:[#allocation4 + $0x3cc] ss:$68 sps:$4 sm:$0xff]  }
  0x40   :  { %v3500_v33 = vld [vmem:[#allocation4 + $0x2c0] ss:$68 sps:$4 sm:$0xff]   ;;  %v3508_v34 = vld [vmem:[#allocation4 + $0x34c] ss:$68 sps:$4 sm:$0xff]   ;;  %v3516_v36 = vld [vmem:[#allocation4 + $0x454] ss:$68 sps:$4 sm:$0xff]  }
  0x41   :  { %990 = vmatpush1.bf16.msra.mxu0 %v3485_v15  ;;  %v3515_v35 = vld [vmem:[#allocation4 + $0x3c8] ss:$68 sps:$4 sm:$0xff]   ;;  %v3514_v38 = vld [vmem:[#allocation4 + $0x3d4] ss:$68 sps:$4 sm:$0xff]   ;;  %v3522_v40 = vld [vmem:[#allocation4 + $0x4dc] ss:$68 sps:$4 sm:$0xff]  }
  0x42   :  { %3035 = vmatmul.mubr.msk.bf16.vlgmr.msra.gmra.mrb[4].mxu1 %vm100_vm0, %v53_v4  ;;  %991 = vmatprep.subr.bf16.mxu0 %v3486_v16  ;;  %v3506_v37 = vld [vmem:[#allocation4 + $0x348] ss:$68 sps:$4 sm:$0xff]   ;;  %v3521_v39 = vld [vmem:[#allocation4 + $0x450] ss:$68 sps:$4 sm:$0xff]   ;;  %v3520_v42 = vld [vmem:[#allocation4 + $0x45c] ss:$68 sps:$4 sm:$0xff]  }
  0x43   :  { %1068 = vmatpush1.bf16.msra.mxu1 %v3470_v13  ;;  %v3512_v41 = vld [vmem:[#allocation4 + $0x3d0] ss:$68 sps:$4 sm:$0xff]   ;;  %v3527_v43 = vld [vmem:[#allocation4 + $0x4d8] ss:$68 sps:$4 sm:$0xff]   ;;  %v3528_v44 = vld [vmem:[#allocation4 + $0x564] ss:$68 sps:$4 sm:$0xff]  }
  0x44   :  { %1069 = vmatprep.subr.bf16.mxu1 %v3478_v14  ;;  %v3518_v45 = vld [vmem:[#allocation4 + $0x458] ss:$68 sps:$4 sm:$0xff]   ;;  %v3526_v46 = vld [vmem:[#allocation4 + $0x4e4] ss:$68 sps:$4 sm:$0xff]   ;;  %v3534_v48 = vld [vmem:[#allocation4 + $0x5ec] ss:$68 sps:$4 sm:$0xff]  }
  0x45   :  { %992 = vmatpush1.bf16.msra.mxu0 %v3491_v19  ;;  %v3533_v47 = vld [vmem:[#allocation4 + $0x560] ss:$68 sps:$4 sm:$0xff]   ;;  %v3532_v50 = vld [vmem:[#allocation4 + $0x56c] ss:$68 sps:$4 sm:$0xff]   ;;  %v3540_v52 = vld [vmem:[#allocation4 + $0x674] ss:$68 sps:$4 sm:$0xff]  }
  0x46   :  { %993 = vmatprep.subr.bf16.mxu0 %v3492_v20  ;;  %v3524_v49 = vld [vmem:[#allocation4 + $0x4e0] ss:$68 sps:$4 sm:$0xff]   ;;  %v3539_v51 = vld [vmem:[#allocation4 + $0x5e8] ss:$68 sps:$4 sm:$0xff]   ;;  %v3538_v54 = vld [vmem:[#allocation4 + $0x5f4] ss:$68 sps:$4 sm:$0xff]  }
  0x47   :  { %1070 = vmatpush1.bf16.msra.mxu1 %v3476_v17  ;;  %v3530_v53 = vld [vmem:[#allocation4 + $0x568] ss:$68 sps:$4 sm:$0xff]   ;;  %v3545_v55 = vld [vmem:[#allocation4 + $0x670] ss:$68 sps:$4 sm:$0xff]   ;;  %v3546_v56 = vld [vmem:[#allocation4 + $0x6fc] ss:$68 sps:$4 sm:$0xff]  }
  0x48   :  { %1071 = vmatprep.subr.bf16.mxu1 %v3484_v18  ;;  %v3536_v57 = vld [vmem:[#allocation4 + $0x5f0] ss:$68 sps:$4 sm:$0xff]   ;;  %v3544_v58 = vld [vmem:[#allocation4 + $0x67c] ss:$68 sps:$4 sm:$0xff]   ;;  %v3550_v61 = vld [vmem:[#allocation4 + $0x704] ss:$68 sps:$4 sm:$0xff]  }
  0x49   :  { %994 = vmatpush1.bf16.msra.mxu0 %v3497_v23  ;;  %v3551_v59 = vld [vmem:[#allocation4 + $0x6f8] ss:$68 sps:$4 sm:$0xff]   ;;  %v3548_v62 = vld [vmem:[#allocation4 + $0x700] ss:$68 sps:$4 sm:$0xff]   ;;  %v3556_v0 = vld [vmem:[#allocation4 + $0x78c] ss:$68 sps:$4 sm:$0xff]  }
  0x4a   :  { %995 = vmatprep.subr.bf16.mxu0 %v3498_v24  ;;  %v3542_v60 = vld [vmem:[#allocation4 + $0x678] ss:$68 sps:$4 sm:$0xff]   ;;  %v3552_v63 = vld [vmem:[#allocation4 + $0x784] ss:$68 sps:$4 sm:$0xff]   ;;  %v3558_v3 = vld [vmem:[#allocation4 + $0x80c] ss:$68 sps:$4 sm:$0xff]  }
  0x4b   :  { %1072 = vmatpush1.bf16.msra.mxu1 %v3482_v21  ;;  %v3554_v1 = vld [vmem:[#allocation4 + $0x788] ss:$68 sps:$4 sm:$0xff]   ;;  %v3557_v2 = vld [vmem:[#allocation4 + $0x780] ss:$68 sps:$4 sm:$0xff]   ;;  %v3562_v4 = vld [vmem:[#allocation4 + $0x814] ss:$68 sps:$4 sm:$0xff]  }
  0x4c   :  { %1073 = vmatprep.subr.bf16.mxu1 %v3490_v22  ;;  %v3560_v5 = vld [vmem:[#allocation4 + $0x810] ss:$68 sps:$4 sm:$0xff]   ;;  %v3563_v6 = vld [vmem:[#allocation4 + $0x808] ss:$68 sps:$4 sm:$0xff]   ;;  %v3569_v8 = vld [vmem:[#allocation4 + $0x89c] ss:$68 sps:$4 sm:$0xff]  }
  0x4d   :  { %996 = vmatpush1.bf16.msra.mxu0 %v3503_v27  ;;  %v3566_v7 = vld [vmem:[#allocation4 + $0x894] ss:$68 sps:$4 sm:$0xff]   ;;  %v4146_v10 = vshrl.u32 %v60_v9, 7  ;;  %v3626_v9 = vld [vmem:[#allocation4 + $0xde4] ss:$68 sps:$4 sm:$0xff]  }
  0x4e   :  { %997 = vmatprep.subr.bf16.mxu0 %v3504_v28  ;;  %v4151_v12 = vld [vmem:[#allocation6] ss:$8 sm:$0xf] }
  0x4f   :  { %1074 = vmatpush1.bf16.msra.mxu1 %v3488_v25  ;;  %v4149_v11 = vsub.s32 0, %v4146_v10  ;;  %v4154_v13 = vsub.s32 1, %v4146_v10  ;;  %v4161_v21 = vsub.s32 3, %v4146_v10  ;;  %v3567_v27 = vld [vmem:[#allocation4 + $0x898] ss:$68 sps:$4 sm:$0xff]  }
  0x50   :  { %1075 = vmatprep.subr.bf16.mxu1 %v3496_v26  ;;  %v3564_v26 = vld [vmem:[#allocation4 + $0x890] ss:$68 sps:$4 sm:$0xff]  }
  0x51   :  { %998 = vmatpush1.bf16.msra.mxu0 %v3509_v31  ;;  %v63_v14 = vrot.slane %v4151_v12, %v4149_v11  ;;  %v67_v15 = vrot.slane %v4151_v12, %v4154_v13  ;;  %v75_v28 = vrot.slane %v4151_v12, %v4161_v21  ;;  %v3575_v31 = vld [vmem:[#allocation4 + $0x924] ss:$68 sps:$4 sm:$0xff]  }
  0x52   :  { %999 = vmatprep.subr.bf16.mxu0 %v3510_v32 }
  0x53   :  { %1076 = vmatpush1.bf16.msra.mxu1 %v3494_v29 }
  0x54   :  { %1077 = vmatprep.subr.bf16.mxu1 %v3502_v30  ;;  %v3572_v30 = vld [vmem:[#allocation4 + $0x91c] ss:$68 sps:$4 sm:$0xff]  }
  0x55   :  { %1000 = vmatpush1.bf16.msra.mxu0 %v3515_v35  ;;  %v3573_v35 = vld [vmem:[#allocation4 + $0x920] ss:$68 sps:$4 sm:$0xff]  }
  0x56   :  { %1001 = vmatprep.subr.bf16.mxu0 %v3516_v36 }
  0x57   :  { %1078 = vmatpush1.bf16.msra.mxu1 %v3500_v33 }
  0x58   :  { %1079 = vmatprep.subr.bf16.mxu1 %v3508_v34  ;;  %v3570_v34 = vld [vmem:[#allocation4 + $0x918] ss:$68 sps:$4 sm:$0xff]  }
  0x59   :  { %1002 = vmatpush1.bf16.msra.mxu0 %v3521_v39  ;;  %v3581_v39 = vld [vmem:[#allocation4 + $0x9ac] ss:$68 sps:$4 sm:$0xff]  }
  0x5a   :  { %1003 = vmatprep.subr.bf16.mxu0 %v3522_v40 }
  0x5b   :  { %1080 = vmatpush1.bf16.msra.mxu1 %v3506_v37 }
  0x5c   :  { %1081 = vmatprep.subr.bf16.mxu1 %v3514_v38  ;;  %v3578_v38 = vld [vmem:[#allocation4 + $0x9a4] ss:$68 sps:$4 sm:$0xff]  }
  0x5d   :  { %1004 = vmatpush1.bf16.msra.mxu0 %v3527_v43  ;;  %v3579_v43 = vld [vmem:[#allocation4 + $0x9a8] ss:$68 sps:$4 sm:$0xff]  }
  0x5e   :  { %1005 = vmatprep.subr.bf16.mxu0 %v3528_v44 }
  0x5f   :  { %1082 = vmatpush1.bf16.msra.mxu1 %v3512_v41 }
  0x60   :  { %1083 = vmatprep.subr.bf16.mxu1 %v3520_v42  ;;  %v3576_v42 = vld [vmem:[#allocation4 + $0x9a0] ss:$68 sps:$4 sm:$0xff]  }
  0x61   :  { %1006 = vmatpush1.bf16.msra.mxu0 %v3533_v47  ;;  %v3582_v47 = vld [vmem:[#allocation4 + $0xa28] ss:$68 sps:$4 sm:$0xff]  }
  0x62   :  { %1007 = vmatprep.subr.bf16.mxu0 %v3534_v48  ;;  %v3585_v48 = vld [vmem:[#allocation4 + $0xa30] ss:$68 sps:$4 sm:$0xff]  }
  0x63   :  { %1084 = vmatpush1.bf16.msra.mxu1 %v3518_v45  ;;  %v3584_v45 = vld [vmem:[#allocation4 + $0xa2c] ss:$68 sps:$4 sm:$0xff]  }
  0x64   :  { %1085 = vmatprep.subr.bf16.mxu1 %v3526_v46  ;;  %v3587_v46 = vld [vmem:[#allocation4 + $0xa34] ss:$68 sps:$4 sm:$0xff]  }
  0x65   :  { %1008 = vmatpush1.bf16.msra.mxu0 %v3539_v51  ;;  %v3588_v51 = vld [vmem:[#allocation4 + $0xab0] ss:$68 sps:$4 sm:$0xff]  }
  0x66   :  { %1009 = vmatprep.subr.bf16.mxu0 %v3540_v52  ;;  %v3591_v52 = vld [vmem:[#allocation4 + $0xab8] ss:$68 sps:$4 sm:$0xff]  }
  0x67   :  { %1086 = vmatpush1.bf16.msra.mxu1 %v3524_v49  ;;  %v3590_v49 = vld [vmem:[#allocation4 + $0xab4] ss:$68 sps:$4 sm:$0xff]  }
  0x68   :  { %1087 = vmatprep.subr.bf16.mxu1 %v3532_v50  ;;  %v3593_v50 = vld [vmem:[#allocation4 + $0xabc] ss:$68 sps:$4 sm:$0xff]  }
  0x69   :  { %1010 = vmatpush1.bf16.msra.mxu0 %v3545_v55  ;;  %v3594_v55 = vld [vmem:[#allocation4 + $0xb38] ss:$68 sps:$4 sm:$0xff]  }
  0x6a   :  { %1011 = vmatprep.subr.bf16.mxu0 %v3546_v56  ;;  %v3597_v56 = vld [vmem:[#allocation4 + $0xb40] ss:$68 sps:$4 sm:$0xff]  }
  0x6b   :  { %1088 = vmatpush1.bf16.msra.mxu1 %v3530_v53  ;;  %v3596_v53 = vld [vmem:[#allocation4 + $0xb3c] ss:$68 sps:$4 sm:$0xff]  }
  0x6c   :  { %1089 = vmatprep.subr.bf16.mxu1 %v3538_v54  ;;  %v3599_v54 = vld [vmem:[#allocation4 + $0xb44] ss:$68 sps:$4 sm:$0xff]  }
  0x6d   :  { %1012 = vmatpush1.bf16.msra.mxu0 %v3551_v59  ;;  %v3600_v59 = vld [vmem:[#allocation4 + $0xbc0] ss:$68 sps:$4 sm:$0xff]  }
  0x6e   :  { %1013 = vmatprep.subr.bf16.mxu0 %v3552_v63  ;;  %v3606_v63 = vld [vmem:[#allocation4 + $0xc48] ss:$68 sps:$4 sm:$0xff]  }
  0x6f   :  { %1090 = vmatpush1.bf16.msra.mxu1 %v3536_v57  ;;  %v3602_v57 = vld [vmem:[#allocation4 + $0xbc4] ss:$68 sps:$4 sm:$0xff]  }
  0x70   :  { %1091 = vmatprep.subr.bf16.mxu1 %v3544_v58  ;;  %v3605_v58 = vld [vmem:[#allocation4 + $0xbcc] ss:$68 sps:$4 sm:$0xff]  }
  0x71   :  { %1014 = vmatpush1.bf16.msra.mxu0 %v3557_v2  ;;  %v3617_v2 = vld [vmem:[#allocation4 + $0xcdc] ss:$68 sps:$4 sm:$0xff]  }
  0x72   :  { %1015 = vmatprep.subr.bf16.mxu0 %v3558_v3  ;;  %v3612_v3 = vld [vmem:[#allocation4 + $0xcd0] ss:$68 sps:$4 sm:$0xff]  }
  0x73   :  { %1092 = vmatpush1.bf16.msra.mxu1 %v3542_v60  ;;  %v3603_v60 = vld [vmem:[#allocation4 + $0xbc8] ss:$68 sps:$4 sm:$0xff]  }
  0x74   :  { %1093 = vmatprep.subr.bf16.mxu1 %v3550_v61  ;;  %v3608_v61 = vld [vmem:[#allocation4 + $0xc4c] ss:$68 sps:$4 sm:$0xff]  }
  0x75   :  { %1016 = vmatpush1.bf16.msra.mxu0 %v3563_v6  ;;  %v3623_v6 = vld [vmem:[#allocation4 + $0xd64] ss:$68 sps:$4 sm:$0xff]  }
  0x76   :  { %1026 = vmatprep.subr.bf16.mxu0 %v3566_v7  ;;  %v3618_v7 = vld [vmem:[#allocation4 + $0xd58] ss:$68 sps:$4 sm:$0xff]  }
  0x77   :  { %1094 = vmatpush1.bf16.msra.mxu1 %v3548_v62  ;;  %v3611_v62 = vld [vmem:[#allocation4 + $0xc54] ss:$68 sps:$4 sm:$0xff]  }
  0x78   :  { %1095 = vmatprep.subr.bf16.mxu1 %v3556_v0  ;;  %v3609_v0 = vld [vmem:[#allocation4 + $0xc50] ss:$68 sps:$4 sm:$0xff]  }
  0x7b   :  { %1096 = vmatpush1.bf16.msra.mxu1 %v3554_v1  ;;  %v3614_v1 = vld [vmem:[#allocation4 + $0xcd4] ss:$68 sps:$4 sm:$0xff]  }
  0x7c   :  { %1097 = vmatprep.subr.bf16.mxu1 %v3562_v4  ;;  %v3615_v4 = vld [vmem:[#allocation4 + $0xcd8] ss:$68 sps:$4 sm:$0xff]  }
  0x7f   :  { %1098 = vmatpush1.bf16.msra.mxu1 %v3560_v5  ;;  %v3620_v5 = vld [vmem:[#allocation4 + $0xd5c] ss:$68 sps:$4 sm:$0xff]  }
  0x80   :  { %1108 = vmatprep.subr.bf16.mxu1 %v3569_v8  ;;  %v3621_v8 = vld [vmem:[#allocation4 + $0xd60] ss:$68 sps:$4 sm:$0xff]  }
 0x10d   :  { %v138_v16 = vpop.f32.mrb[0].mxu1 }
 0x10e   :  { %v139_v17 = vadd.f32 %v138_v16, %v63_v14  ;;  %v140_v18 = vpop.f32.mrb[1].mxu1  ;;  %v3629_v14 = vld [vmem:[#allocation4 + $0xdec] ss:$68 sps:$4 sm:$0xff]  }
 0x10f   :  { %v141_v19 = vadd.f32 %v140_v18, %v67_v15  ;;  %v142_v20 = vpop.f32.mrb[2].mxu1  ;;  %v3624_v15 = vld [vmem:[#allocation4 + $0xde0] ss:$68 sps:$4 sm:$0xff]   ;;  %v3627_v16 = vld [vmem:[#allocation4 + $0xde8] ss:$68 sps:$4 sm:$0xff]  }
 0x110   :  { %v186_v22 = vmax.f32 %v139_v17, 0.0  ;;  %v143_v23 = vpop.f32.mrb[3].mxu1  ;;  %v3632_v17 = vld [vmem:[#allocation4 + $0xe6c] ss:$68 sps:$4 sm:$0xff]   ;;  %v3635_v18 = vld [vmem:[#allocation4 + $0xe74] ss:$68 sps:$4 sm:$0xff]  }
 0x111   :  { %v187_v24 = vmax.f32 %v141_v19, 0.0  ;;  %v3630_v19 = vld [vmem:[#allocation4 + $0xe68] ss:$68 sps:$4 sm:$0xff]   ;;  %v3633_v20 = vld [vmem:[#allocation4 + $0xe70] ss:$68 sps:$4 sm:$0xff]  }
 0x112   :  { %v190_v29 = vpack.c.bf16 %v186_v22, %v186_v22  ;;  %v3638_v22 = vld [vmem:[#allocation4 + $0xef4] ss:$68 sps:$4 sm:$0xff]   ;;  %v3641_v23 = vld [vmem:[#allocation4 + $0xefc] ss:$68 sps:$4 sm:$0xff]  }
 0x113   :  { %v191_v25 = vpack.c.bf16 %v187_v24, %v187_v24  ;;  %v3636_v24 = vld [vmem:[#allocation4 + $0xef0] ss:$68 sps:$4 sm:$0xff]  }
 0x115   :  { %1017 = vmatprep.mubr.bf16.mxu0 %v191_v25  ;;  %1099 = vmatprep.mubr.bf16.mxu1 %v191_v25  ;;  %v4165_v32 = vpop.f32.mrb[4].mxu1  ;;  %v3639_v25 = vld [vmem:[#allocation4 + $0xef8] ss:$68 sps:$4 sm:$0xff]  }
 0x116   :  { %1018 = vmatmul.mubr.bf16.vlgmr.msra.gmra.mrb[0].mxu0 %v190_v29  ;;  %1100 = vmatmul.mubr.bf16.vlgmr.msra.gmra.mrb[8].mxu1 %v190_v29  ;;  %v181_v33 = vpop.f32.mrb[5].mxu1  ;;  %v3642_v29 = vld [vmem:[#allocation4 + $0xf78] ss:$68 sps:$4 sm:$0xff]  }
 0x117   :  { %1027 = vmatpush1.bf16.msra.mxu0 %v3564_v26  ;;  %1109 = vmatpush1.bf16.msra.mxu1 %v3567_v27  ;;  %v182_v36 = vadd.f32 %v181_v33, %v75_v28  ;;  %v183_v37 = vpop.f32.mrb[6].mxu1  ;;  %v4168_v26 = vsub.s32 2, %v4146_v10  ;;  %v3644_v27 = vld [vmem:[#allocation4 + $0xf7c] ss:$68 sps:$4 sm:$0xff]   ;;  %v3647_v28 = vld [vmem:[#allocation4 + $0xf84] ss:$68 sps:$4 sm:$0xff]  }
 0x118   :  { %1028 = vmatprep.subr.bf16.mxu0 %v3572_v30  ;;  %1110 = vmatprep.subr.bf16.mxu1 %v3575_v31  ;;  %v184_v40 = vpop.f32.mrb[7].mxu1  ;;  %v3645_v30 = vld [vmem:[#allocation4 + $0xf80] ss:$68 sps:$4 sm:$0xff]   ;;  %v3656_v37 = vld [vmem:[#allocation4 + $0x108c] ss:$68 sps:$4 sm:$0xff]  }
 0x119   :  { %v189_v41 = vmax.f32 %v182_v36, 0.0  ;;  %v71_v31 = vrot.slane %v4151_v12, %v4168_v26  ;;  %v3650_v33 = vld [vmem:[#allocation4 + $0x1004] ss:$68 sps:$4 sm:$0xff]   ;;  %v3657_v40 = vld [vmem:[#allocation4 + $0x1090] ss:$68 sps:$4 sm:$0xff]  }
 0x11a   :  { %v3651_v36 = vld [vmem:[#allocation4 + $0x1008] ss:$68 sps:$4 sm:$0xff]  }
 0x11b   :  { %1029 = vmatpush1.bf16.msra.mxu0 %v3570_v34  ;;  %1111 = vmatpush1.bf16.msra.mxu1 %v3573_v35  ;;  %v193_v44 = vpack.c.bf16 %v189_v41, %v189_v41  ;;  %v3653_v34 = vld [vmem:[#allocation4 + $0x100c] ss:$68 sps:$4 sm:$0xff]   ;;  %v3648_v35 = vld [vmem:[#allocation4 + $0x1000] ss:$68 sps:$4 sm:$0xff]   ;;  %v180_v10 = vadd.f32 %v4165_v32, %v71_v31 }
 0x11c   :  { %1030 = vmatprep.subr.bf16.mxu0 %v3578_v38  ;;  %1112 = vmatprep.subr.bf16.mxu1 %v3581_v39  ;;  %v3659_v38 = vld [vmem:[#allocation4 + $0x1094] ss:$68 sps:$4 sm:$0xff]   ;;  %v3654_v39 = vld [vmem:[#allocation4 + $0x1088] ss:$68 sps:$4 sm:$0xff]  }
 0x11d   :  { %1058 = vmatprep.mubr.bf16.mxu0 %v193_v44  ;;  %1140 = vmatprep.mubr.bf16.mxu1 %v193_v44  ;;  %v188_v41 = vmax.f32 %v180_v10, 0.0  ;;  %v3662_v12 = vld [vmem:[#allocation4 + $0x24] ss:$68 sps:$4 sm:$0xff]   ;;  %v3668_v32 = vld [vmem:[#allocation4 + $0xac] ss:$68 sps:$4 sm:$0xff]  }
 0x11e   :  { %v3663_v44 = vld [vmem:[#allocation4 + $0x28] ss:$68 sps:$4 sm:$0xff]   ;;  %v3743_v10 = vld [vmem:[#allocation4 + $0x714] ss:$68 sps:$4 sm:$0xff]  }
 0x11f   :  { %1031 = vmatpush1.bf16.msra.mxu0 %v3576_v42  ;;  %1113 = vmatpush1.bf16.msra.mxu1 %v3579_v43  ;;  %v3665_v42 = vld [vmem:[#allocation4 + $0x2c] ss:$68 sps:$4 sm:$0xff]   ;;  %v3660_v43 = vld [vmem:[#allocation4 + $0x20] ss:$68 sps:$4 sm:$0xff]  }
 0x120   :  { %1032 = vmatprep.subr.bf16.mxu0 %v3584_v45  ;;  %1114 = vmatprep.subr.bf16.mxu1 %v3587_v46  ;;  %v192_v45 = vpack.c.bf16 %v188_v41, %v188_v41  ;;  %v3671_v46 = vld [vmem:[#allocation4 + $0xb4] ss:$68 sps:$4 sm:$0xff]   ;;  %v3734_v31 = vld [vmem:[#allocation4 + $0x684] ss:$68 sps:$4 sm:$0xff]  }
 0x121   :  { %v3744_v41 = vld [vmem:[#allocation4 + $0x790] ss:$68 sps:$4 sm:$0xff]  }
 0x123   :  { %1033 = vmatpush1.bf16.msra.mxu0 %v3582_v47  ;;  %1115 = vmatpush1.bf16.msra.mxu1 %v3585_v48  ;;  %v3666_v47 = vld [vmem:[#allocation4 + $0xa8] ss:$68 sps:$4 sm:$0xff]   ;;  %v3669_v48 = vld [vmem:[#allocation4 + $0xb0] ss:$68 sps:$4 sm:$0xff]  }
 0x124   :  { %1034 = vmatprep.subr.bf16.mxu0 %v3590_v49  ;;  %1116 = vmatprep.subr.bf16.mxu1 %v3593_v50  ;;  %v3674_v49 = vld [vmem:[#allocation4 + $0x134] ss:$68 sps:$4 sm:$0xff]   ;;  %v3677_v50 = vld [vmem:[#allocation4 + $0x13c] ss:$68 sps:$4 sm:$0xff]  }
 0x127   :  { %1035 = vmatpush1.bf16.msra.mxu0 %v3588_v51  ;;  %1117 = vmatpush1.bf16.msra.mxu1 %v3591_v52  ;;  %v3672_v51 = vld [vmem:[#allocation4 + $0x130] ss:$68 sps:$4 sm:$0xff]   ;;  %v3675_v52 = vld [vmem:[#allocation4 + $0x138] ss:$68 sps:$4 sm:$0xff]  }
 0x128   :  { %1036 = vmatprep.subr.bf16.mxu0 %v3596_v53  ;;  %1118 = vmatprep.subr.bf16.mxu1 %v3599_v54  ;;  %v3680_v53 = vld [vmem:[#allocation4 + $0x1bc] ss:$68 sps:$4 sm:$0xff]   ;;  %v3683_v54 = vld [vmem:[#allocation4 + $0x1c4] ss:$68 sps:$4 sm:$0xff]  }
 0x12b   :  { %1037 = vmatpush1.bf16.msra.mxu0 %v3594_v55  ;;  %1119 = vmatpush1.bf16.msra.mxu1 %v3597_v56  ;;  %v3678_v55 = vld [vmem:[#allocation4 + $0x1b8] ss:$68 sps:$4 sm:$0xff]   ;;  %v3681_v56 = vld [vmem:[#allocation4 + $0x1c0] ss:$68 sps:$4 sm:$0xff]  }
 0x12c   :  { %1038 = vmatprep.subr.bf16.mxu0 %v3602_v57  ;;  %1120 = vmatprep.subr.bf16.mxu1 %v3605_v58  ;;  %v3686_v57 = vld [vmem:[#allocation4 + $0x244] ss:$68 sps:$4 sm:$0xff]   ;;  %v3689_v58 = vld [vmem:[#allocation4 + $0x24c] ss:$68 sps:$4 sm:$0xff]  }
 0x12f   :  { %1039 = vmatpush1.bf16.msra.mxu0 %v3600_v59  ;;  %1121 = vmatpush1.bf16.msra.mxu1 %v3603_v60  ;;  %v3684_v59 = vld [vmem:[#allocation4 + $0x240] ss:$68 sps:$4 sm:$0xff]   ;;  %v3687_v60 = vld [vmem:[#allocation4 + $0x248] ss:$68 sps:$4 sm:$0xff]  }
 0x130   :  { %1040 = vmatprep.subr.bf16.mxu0 %v3608_v61  ;;  %1122 = vmatprep.subr.bf16.mxu1 %v3611_v62  ;;  %v3692_v61 = vld [vmem:[#allocation4 + $0x2cc] ss:$68 sps:$4 sm:$0xff]   ;;  %v3695_v62 = vld [vmem:[#allocation4 + $0x2d4] ss:$68 sps:$4 sm:$0xff]  }
 0x133   :  { %1041 = vmatpush1.bf16.msra.mxu0 %v3606_v63  ;;  %1123 = vmatpush1.bf16.msra.mxu1 %v3609_v0  ;;  %v3690_v63 = vld [vmem:[#allocation4 + $0x2c8] ss:$68 sps:$4 sm:$0xff]   ;;  %v3693_v0 = vld [vmem:[#allocation4 + $0x2d0] ss:$68 sps:$4 sm:$0xff]  }
 0x134   :  { %1042 = vmatprep.subr.bf16.mxu0 %v3614_v1  ;;  %1124 = vmatprep.subr.bf16.mxu1 %v3617_v2  ;;  %v3698_v1 = vld [vmem:[#allocation4 + $0x354] ss:$68 sps:$4 sm:$0xff]   ;;  %v3701_v2 = vld [vmem:[#allocation4 + $0x35c] ss:$68 sps:$4 sm:$0xff]  }
 0x137   :  { %1043 = vmatpush1.bf16.msra.mxu0 %v3612_v3  ;;  %1125 = vmatpush1.bf16.msra.mxu1 %v3615_v4  ;;  %v3696_v3 = vld [vmem:[#allocation4 + $0x350] ss:$68 sps:$4 sm:$0xff]   ;;  %v3699_v4 = vld [vmem:[#allocation4 + $0x358] ss:$68 sps:$4 sm:$0xff]  }
 0x138   :  { %1044 = vmatprep.subr.bf16.mxu0 %v3620_v5  ;;  %1126 = vmatprep.subr.bf16.mxu1 %v3623_v6  ;;  %v3704_v5 = vld [vmem:[#allocation4 + $0x3dc] ss:$68 sps:$4 sm:$0xff]   ;;  %v3707_v6 = vld [vmem:[#allocation4 + $0x3e4] ss:$68 sps:$4 sm:$0xff]  }
 0x13b   :  { %1045 = vmatpush1.bf16.msra.mxu0 %v3618_v7  ;;  %1127 = vmatpush1.bf16.msra.mxu1 %v3621_v8  ;;  %v3702_v7 = vld [vmem:[#allocation4 + $0x3d8] ss:$68 sps:$4 sm:$0xff]   ;;  %v3705_v8 = vld [vmem:[#allocation4 + $0x3e0] ss:$68 sps:$4 sm:$0xff]  }
 0x13c   :  { %1046 = vmatprep.subr.bf16.mxu0 %v3626_v9  ;;  %1128 = vmatprep.subr.bf16.mxu1 %v3629_v14  ;;  %v3710_v9 = vld [vmem:[#allocation4 + $0x464] ss:$68 sps:$4 sm:$0xff]   ;;  %v3713_v14 = vld [vmem:[#allocation4 + $0x46c] ss:$68 sps:$4 sm:$0xff]  }
 0x13f   :  { %1047 = vmatpush1.bf16.msra.mxu0 %v3624_v15  ;;  %1129 = vmatpush1.bf16.msra.mxu1 %v3627_v16  ;;  %v3708_v15 = vld [vmem:[#allocation4 + $0x460] ss:$68 sps:$4 sm:$0xff]   ;;  %v3711_v16 = vld [vmem:[#allocation4 + $0x468] ss:$68 sps:$4 sm:$0xff]  }
 0x140   :  { %1048 = vmatprep.subr.bf16.mxu0 %v3632_v17  ;;  %1130 = vmatprep.subr.bf16.mxu1 %v3635_v18  ;;  %v3716_v17 = vld [vmem:[#allocation4 + $0x4ec] ss:$68 sps:$4 sm:$0xff]   ;;  %v3719_v18 = vld [vmem:[#allocation4 + $0x4f4] ss:$68 sps:$4 sm:$0xff]  }
 0x143   :  { %1049 = vmatpush1.bf16.msra.mxu0 %v3630_v19  ;;  %1131 = vmatpush1.bf16.msra.mxu1 %v3633_v20  ;;  %v3714_v19 = vld [vmem:[#allocation4 + $0x4e8] ss:$68 sps:$4 sm:$0xff]   ;;  %v3717_v20 = vld [vmem:[#allocation4 + $0x4f0] ss:$68 sps:$4 sm:$0xff]  }
 0x144   :  { %1050 = vmatprep.subr.bf16.mxu0 %v3638_v22  ;;  %1132 = vmatprep.subr.bf16.mxu1 %v3641_v23  ;;  %v3722_v22 = vld [vmem:[#allocation4 + $0x574] ss:$68 sps:$4 sm:$0xff]   ;;  %v3725_v23 = vld [vmem:[#allocation4 + $0x57c] ss:$68 sps:$4 sm:$0xff]  }
 0x147   :  { %1051 = vmatpush1.bf16.msra.mxu0 %v3636_v24  ;;  %1133 = vmatpush1.bf16.msra.mxu1 %v3639_v25  ;;  %v3720_v24 = vld [vmem:[#allocation4 + $0x570] ss:$68 sps:$4 sm:$0xff]   ;;  %v3723_v25 = vld [vmem:[#allocation4 + $0x578] ss:$68 sps:$4 sm:$0xff]  }
 0x148   :  { %1052 = vmatprep.subr.bf16.mxu0 %v3644_v27  ;;  %1134 = vmatprep.subr.bf16.mxu1 %v3647_v28  ;;  %v3728_v27 = vld [vmem:[#allocation4 + $0x5fc] ss:$68 sps:$4 sm:$0xff]   ;;  %v3731_v28 = vld [vmem:[#allocation4 + $0x604] ss:$68 sps:$4 sm:$0xff]  }
 0x14b   :  { %1053 = vmatpush1.bf16.msra.mxu0 %v3642_v29  ;;  %1135 = vmatpush1.bf16.msra.mxu1 %v3645_v30  ;;  %v3726_v29 = vld [vmem:[#allocation4 + $0x5f8] ss:$68 sps:$4 sm:$0xff]   ;;  %v3729_v30 = vld [vmem:[#allocation4 + $0x600] ss:$68 sps:$4 sm:$0xff]  }
 0x14c   :  { %1054 = vmatprep.subr.bf16.mxu0 %v3650_v33  ;;  %1136 = vmatprep.subr.bf16.mxu1 %v3653_v34  ;;  %v3737_v33 = vld [vmem:[#allocation4 + $0x68c] ss:$68 sps:$4 sm:$0xff]   ;;  %v3732_v34 = vld [vmem:[#allocation4 + $0x680] ss:$68 sps:$4 sm:$0xff]  }
 0x14f   :  { %1055 = vmatpush1.bf16.msra.mxu0 %v3648_v35  ;;  %1137 = vmatpush1.bf16.msra.mxu1 %v3651_v36  ;;  %v3735_v35 = vld [vmem:[#allocation4 + $0x688] ss:$68 sps:$4 sm:$0xff]  }
 0x150   :  { %1056 = vmatprep.subr.bf16.mxu0 %v3656_v37  ;;  %1138 = vmatprep.subr.bf16.mxu1 %v3659_v38  ;;  %v3740_v36 = vld [vmem:[#allocation4 + $0x70c] ss:$68 sps:$4 sm:$0xff]  }
 0x151   :  { %v3738_v37 = vld [vmem:[#allocation4 + $0x708] ss:$68 sps:$4 sm:$0xff]   ;;  %v3741_v38 = vld [vmem:[#allocation4 + $0x710] ss:$68 sps:$4 sm:$0xff]  }
 0x153   :  { %1057 = vmatpush1.bf16.msra.mxu0 %v3654_v39  ;;  %1139 = vmatpush1.bf16.msra.mxu1 %v3657_v40  ;;  %v3746_v39 = vld [vmem:[#allocation4 + $0x794] ss:$68 sps:$4 sm:$0xff]   ;;  %v3749_v40 = vld [vmem:[#allocation4 + $0x79c] ss:$68 sps:$4 sm:$0xff]  }
 0x154   :  { %1948 = vmatprep.subr.bf16.mxu0 %v3662_v12  ;;  %2030 = vmatprep.subr.bf16.mxu1 %v3665_v42  ;;  %v3747_v12 = vld [vmem:[#allocation4 + $0x798] ss:$68 sps:$4 sm:$0xff]  }
 0x155   :  { %v3752_v42 = vld [vmem:[#allocation4 + $0x81c] ss:$68 sps:$4 sm:$0xff]  }
 0x156   :  { %1059 = vmatmul.mubr.bf16.vlgmr.msra.gmra.mrb[0].mxu0 %v192_v45  ;;  %1141 = vmatmul.mubr.bf16.vlgmr.msra.gmra.mrb[8].mxu1 %v192_v45  ;;  %v3753_v45 = vld [vmem:[#allocation4 + $0x820] ss:$68 sps:$4 sm:$0xff]  }
 0x157   :  { %1949 = vmatpush1.bf16.msra.mxu0 %v3660_v43  ;;  %2031 = vmatpush1.bf16.msra.mxu1 %v3663_v44  ;;  %v3755_v43 = vld [vmem:[#allocation4 + $0x824] ss:$68 sps:$4 sm:$0xff]   ;;  %v3750_v44 = vld [vmem:[#allocation4 + $0x818] ss:$68 sps:$4 sm:$0xff]  }
 0x158   :  { %1950 = vmatprep.subr.bf16.mxu0 %v3668_v32  ;;  %2032 = vmatprep.subr.bf16.mxu1 %v3671_v46  ;;  %v3758_v32 = vld [vmem:[#allocation4 + $0x8a4] ss:$68 sps:$4 sm:$0xff]   ;;  %v3761_v46 = vld [vmem:[#allocation4 + $0x8ac] ss:$68 sps:$4 sm:$0xff]  }
 0x15b   :  { %1951 = vmatpush1.bf16.msra.mxu0 %v3666_v47  ;;  %2033 = vmatpush1.bf16.msra.mxu1 %v3669_v48  ;;  %v4173_v47 = vld [vmem:[#allocation6 + $0x1] ss:$8 sm:$0xf] }
 0x15c   :  { %1952 = vmatprep.subr.bf16.mxu0 %v3674_v49  ;;  %2034 = vmatprep.subr.bf16.mxu1 %v3677_v50  ;;  %v328_v48 = vrot.slane %v4173_v47, %v4149_v11  ;;  %v332_v49 = vrot.slane %v4173_v47, %v4154_v13  ;;  %v340_v50 = vrot.slane %v4173_v47, %v4161_v21 }
 0x15f   :  { %1953 = vmatpush1.bf16.msra.mxu0 %v3672_v51  ;;  %2035 = vmatpush1.bf16.msra.mxu1 %v3675_v52 }
 0x160   :  { %1954 = vmatprep.subr.bf16.mxu0 %v3680_v53  ;;  %2036 = vmatprep.subr.bf16.mxu1 %v3683_v54 }
 0x163   :  { %1955 = vmatpush1.bf16.msra.mxu0 %v3678_v55  ;;  %2037 = vmatpush1.bf16.msra.mxu1 %v3681_v56 }
 0x164   :  { %1956 = vmatprep.subr.bf16.mxu0 %v3686_v57  ;;  %2038 = vmatprep.subr.bf16.mxu1 %v3689_v58 }
 0x167   :  { %1957 = vmatpush1.bf16.msra.mxu0 %v3684_v59  ;;  %2039 = vmatpush1.bf16.msra.mxu1 %v3687_v60 }
 0x168   :  { %1958 = vmatprep.subr.bf16.mxu0 %v3692_v61  ;;  %2040 = vmatprep.subr.bf16.mxu1 %v3695_v62 }
 0x16b   :  { %1959 = vmatpush1.bf16.msra.mxu0 %v3690_v63  ;;  %2041 = vmatpush1.bf16.msra.mxu1 %v3693_v0 }
 0x16c   :  { %1960 = vmatprep.subr.bf16.mxu0 %v3698_v1  ;;  %2042 = vmatprep.subr.bf16.mxu1 %v3701_v2  ;;  %v3756_v2 = vld [vmem:[#allocation4 + $0x8a0] ss:$68 sps:$4 sm:$0xff]  }
 0x16f   :  { %1961 = vmatpush1.bf16.msra.mxu0 %v3696_v3  ;;  %2043 = vmatpush1.bf16.msra.mxu1 %v3699_v4  ;;  %v3759_v3 = vld [vmem:[#allocation4 + $0x8a8] ss:$68 sps:$4 sm:$0xff]  }
 0x170   :  { %1962 = vmatprep.subr.bf16.mxu0 %v3704_v5  ;;  %2044 = vmatprep.subr.bf16.mxu1 %v3707_v6  ;;  %v3764_v5 = vld [vmem:[#allocation4 + $0x92c] ss:$68 sps:$4 sm:$0xff]   ;;  %v3767_v6 = vld [vmem:[#allocation4 + $0x934] ss:$68 sps:$4 sm:$0xff]  }
 0x173   :  { %1963 = vmatpush1.bf16.msra.mxu0 %v3702_v7  ;;  %2045 = vmatpush1.bf16.msra.mxu1 %v3705_v8  ;;  %v3762_v8 = vld [vmem:[#allocation4 + $0x928] ss:$68 sps:$4 sm:$0xff]  }
 0x174   :  { %1964 = vmatprep.subr.bf16.mxu0 %v3710_v9  ;;  %2046 = vmatprep.subr.bf16.mxu1 %v3713_v14  ;;  %v3765_v9 = vld [vmem:[#allocation4 + $0x930] ss:$68 sps:$4 sm:$0xff]  }
 0x175   :  { %v3770_v14 = vld [vmem:[#allocation4 + $0x9b4] ss:$68 sps:$4 sm:$0xff]  }
 0x177   :  { %1965 = vmatpush1.bf16.msra.mxu0 %v3708_v15  ;;  %2047 = vmatpush1.bf16.msra.mxu1 %v3711_v16  ;;  %v3773_v15 = vld [vmem:[#allocation4 + $0x9bc] ss:$68 sps:$4 sm:$0xff]   ;;  %v3768_v16 = vld [vmem:[#allocation4 + $0x9b0] ss:$68 sps:$4 sm:$0xff]  }
 0x178   :  { %1966 = vmatprep.subr.bf16.mxu0 %v3716_v17  ;;  %2048 = vmatprep.subr.bf16.mxu1 %v3719_v18  ;;  %v3771_v17 = vld [vmem:[#allocation4 + $0x9b8] ss:$68 sps:$4 sm:$0xff]  }
 0x179   :  { %v3776_v18 = vld [vmem:[#allocation4 + $0xa3c] ss:$68 sps:$4 sm:$0xff]  }
 0x17b   :  { %1967 = vmatpush1.bf16.msra.mxu0 %v3714_v19  ;;  %2049 = vmatpush1.bf16.msra.mxu1 %v3717_v20  ;;  %v3779_v19 = vld [vmem:[#allocation4 + $0xa44] ss:$68 sps:$4 sm:$0xff]   ;;  %v3774_v20 = vld [vmem:[#allocation4 + $0xa38] ss:$68 sps:$4 sm:$0xff]  }
 0x17c   :  { %1968 = vmatprep.subr.bf16.mxu0 %v3722_v22  ;;  %2050 = vmatprep.subr.bf16.mxu1 %v3725_v23  ;;  %v3777_v22 = vld [vmem:[#allocation4 + $0xa40] ss:$68 sps:$4 sm:$0xff]  }
 0x17d   :  { %v3782_v23 = vld [vmem:[#allocation4 + $0xac4] ss:$68 sps:$4 sm:$0xff]  }
 0x17f   :  { %1969 = vmatpush1.bf16.msra.mxu0 %v3720_v24  ;;  %2051 = vmatpush1.bf16.msra.mxu1 %v3723_v25  ;;  %v3785_v24 = vld [vmem:[#allocation4 + $0xacc] ss:$68 sps:$4 sm:$0xff]   ;;  %v3780_v25 = vld [vmem:[#allocation4 + $0xac0] ss:$68 sps:$4 sm:$0xff]  }
 0x180   :  { %1970 = vmatprep.subr.bf16.mxu0 %v3728_v27  ;;  %2052 = vmatprep.subr.bf16.mxu1 %v3731_v28  ;;  %v3783_v27 = vld [vmem:[#allocation4 + $0xac8] ss:$68 sps:$4 sm:$0xff]  }
 0x181   :  { %v3788_v28 = vld [vmem:[#allocation4 + $0xb4c] ss:$68 sps:$4 sm:$0xff]  }
 0x183   :  { %1971 = vmatpush1.bf16.msra.mxu0 %v3726_v29  ;;  %2053 = vmatpush1.bf16.msra.mxu1 %v3729_v30  ;;  %v3791_v29 = vld [vmem:[#allocation4 + $0xb54] ss:$68 sps:$4 sm:$0xff]   ;;  %v3786_v30 = vld [vmem:[#allocation4 + $0xb48] ss:$68 sps:$4 sm:$0xff]  }
 0x184   :  { %1972 = vmatprep.subr.bf16.mxu0 %v3734_v31  ;;  %2054 = vmatprep.subr.bf16.mxu1 %v3737_v33  ;;  %v3789_v31 = vld [vmem:[#allocation4 + $0xb50] ss:$68 sps:$4 sm:$0xff]  }
 0x185   :  { %v3794_v33 = vld [vmem:[#allocation4 + $0xbd4] ss:$68 sps:$4 sm:$0xff]  }
 0x187   :  { %1973 = vmatpush1.bf16.msra.mxu0 %v3732_v34  ;;  %2055 = vmatpush1.bf16.msra.mxu1 %v3735_v35  ;;  %v3797_v34 = vld [vmem:[#allocation4 + $0xbdc] ss:$68 sps:$4 sm:$0xff]   ;;  %v3792_v35 = vld [vmem:[#allocation4 + $0xbd0] ss:$68 sps:$4 sm:$0xff]  }
 0x188   :  { %1974 = vmatprep.subr.bf16.mxu0 %v3740_v36  ;;  %2056 = vmatprep.subr.bf16.mxu1 %v3743_v10  ;;  %v3795_v36 = vld [vmem:[#allocation4 + $0xbd8] ss:$68 sps:$4 sm:$0xff]  }
 0x189   :  { %v3800_v10 = vld [vmem:[#allocation4 + $0xc5c] ss:$68 sps:$4 sm:$0xff]  }
 0x18b   :  { %1975 = vmatpush1.bf16.msra.mxu0 %v3738_v37  ;;  %2057 = vmatpush1.bf16.msra.mxu1 %v3741_v38  ;;  %v3803_v37 = vld [vmem:[#allocation4 + $0xc64] ss:$68 sps:$4 sm:$0xff]   ;;  %v3798_v38 = vld [vmem:[#allocation4 + $0xc58] ss:$68 sps:$4 sm:$0xff]  }
 0x18c   :  { %1976 = vmatprep.subr.bf16.mxu0 %v3746_v39  ;;  %2058 = vmatprep.subr.bf16.mxu1 %v3749_v40  ;;  %v3801_v39 = vld [vmem:[#allocation4 + $0xc60] ss:$68 sps:$4 sm:$0xff]  }
 0x18d   :  { %v3806_v40 = vld [vmem:[#allocation4 + $0xce4] ss:$68 sps:$4 sm:$0xff]  }
 0x18f   :  { %1977 = vmatpush1.bf16.msra.mxu0 %v3744_v41  ;;  %2059 = vmatpush1.bf16.msra.mxu1 %v3747_v12  ;;  %v3809_v41 = vld [vmem:[#allocation4 + $0xcec] ss:$68 sps:$4 sm:$0xff]   ;;  %v3804_v12 = vld [vmem:[#allocation4 + $0xce0] ss:$68 sps:$4 sm:$0xff]  }
 0x190   :  { %1978 = vmatprep.subr.bf16.mxu0 %v3752_v42  ;;  %2060 = vmatprep.subr.bf16.mxu1 %v3755_v43  ;;  %v3807_v42 = vld [vmem:[#allocation4 + $0xce8] ss:$68 sps:$4 sm:$0xff]  }
 0x191   :  { %v3812_v43 = vld [vmem:[#allocation4 + $0xd6c] ss:$68 sps:$4 sm:$0xff]  }
 0x193   :  { %1979 = vmatpush1.bf16.msra.mxu0 %v3750_v44  ;;  %2061 = vmatpush1.bf16.msra.mxu1 %v3753_v45  ;;  %v3815_v44 = vld [vmem:[#allocation4 + $0xd74] ss:$68 sps:$4 sm:$0xff]   ;;  %v3810_v45 = vld [vmem:[#allocation4 + $0xd68] ss:$68 sps:$4 sm:$0xff]  }
 0x194   :  { %1989 = vmatprep.subr.bf16.mxu0 %v3758_v32  ;;  %2071 = vmatprep.subr.bf16.mxu1 %v3761_v46  ;;  %v3813_v32 = vld [vmem:[#allocation4 + $0xd70] ss:$68 sps:$4 sm:$0xff]  }
 0x195   :  { %v3818_v46 = vld [vmem:[#allocation4 + $0xdf4] ss:$68 sps:$4 sm:$0xff]  }
 0x229   :  { %v1060_v51 = vpop.f32.mrb[0].mxu0  ;;  %v4181_v52 = vpop.f32.mrb[8].mxu1 }
 0x22a   :  { %v3426_v53 = vadd.f32 %v1060_v51, %v328_v48  ;;  %v1062_v54 = vpop.f32.mrb[1].mxu0  ;;  %v1144_v55 = vpop.f32.mrb[9].mxu1  ;;  %v3821_v48 = vld [vmem:[#allocation4 + $0xdfc] ss:$68 sps:$4 sm:$0xff]  }
 0x22b   :  { %v3427_v56 = vadd.f32 %v1062_v54, %v332_v49  ;;  %v3429_v57 = vadd.f32 %v1144_v55, %v340_v50  ;;  %v1064_v58 = vpop.f32.mrb[2].mxu0  ;;  %v1146_v59 = vpop.f32.mrb[10].mxu1  ;;  %v3816_v49 = vld [vmem:[#allocation4 + $0xdf0] ss:$68 sps:$4 sm:$0xff]   ;;  %v3819_v50 = vld [vmem:[#allocation4 + $0xdf8] ss:$68 sps:$4 sm:$0xff]  }
 0x22c   :  { %v1149_v60 = vmax.f32 %v3426_v53, 0.0  ;;  %v1065_v61 = vpop.f32.mrb[3].mxu0  ;;  %v1147_v62 = vpop.f32.mrb[11].mxu1  ;;  %v3824_v51 = vld [vmem:[#allocation4 + $0xe7c] ss:$68 sps:$4 sm:$0xff]  }
 0x22d   :  { %v1150_v63 = vmax.f32 %v3427_v56, 0.0  ;;  %v1152_v0 = vmax.f32 %v3429_v57, 0.0  ;;  %v3827_v53 = vld [vmem:[#allocation4 + $0xe84] ss:$68 sps:$4 sm:$0xff]   ;;  %v3822_v54 = vld [vmem:[#allocation4 + $0xe78] ss:$68 sps:$4 sm:$0xff]  }
 0x22e   :  { %v1153_v4 = vpack.c.bf16 %v1149_v60, %v1149_v60  ;;  %v3825_v55 = vld [vmem:[#allocation4 + $0xe80] ss:$68 sps:$4 sm:$0xff]   ;;  %v3833_v57 = vld [vmem:[#allocation4 + $0xf0c] ss:$68 sps:$4 sm:$0xff]   ;;  %v3839_v61 = vld [vmem:[#allocation4 + $0xf94] ss:$68 sps:$4 sm:$0xff]  }
 0x22f   :  { %v1154_v1 = vpack.c.bf16 %v1150_v63, %v1150_v63  ;;  %v1156_v7 = vpack.c.bf16 %v1152_v0, %v1152_v0  ;;  %v3830_v56 = vld [vmem:[#allocation4 + $0xf04] ss:$68 sps:$4 sm:$0xff]   ;;  %v3836_v60 = vld [vmem:[#allocation4 + $0xf8c] ss:$68 sps:$4 sm:$0xff]   ;;  %v336_v0 = vrot.slane %v4173_v47, %v4168_v26  ;;  %v3854_v47 = vld [vmem:[#allocation4 + $0x34] ss:$68 sps:$4 sm:$0xff]  }
 0x230   :  { %v3828_v58 = vld [vmem:[#allocation4 + $0xf00] ss:$68 sps:$4 sm:$0xff]   ;;  %v3831_v59 = vld [vmem:[#allocation4 + $0xf08] ss:$68 sps:$4 sm:$0xff]   ;;  %v3837_v63 = vld [vmem:[#allocation4 + $0xf90] ss:$68 sps:$4 sm:$0xff]  }
 0x231   :  { %1980 = vmatprep.mubr.bf16.mxu0 %v1154_v1  ;;  %2062 = vmatprep.mubr.bf16.mxu1 %v1154_v1  ;;  %v3834_v62 = vld [vmem:[#allocation4 + $0xf88] ss:$68 sps:$4 sm:$0xff]   ;;  %v3842_v1 = vld [vmem:[#allocation4 + $0x1014] ss:$68 sps:$4 sm:$0xff]  }
 0x232   :  { %1981 = vmatmul.mubr.bf16.vlgmr.msra.gmra.mrb[4].mxu0 %v1153_v4  ;;  %2063 = vmatmul.mubr.bf16.vlgmr.msra.gmra.mrb[12].mxu1 %v1153_v4  ;;  %v3843_v4 = vld [vmem:[#allocation4 + $0x1018] ss:$68 sps:$4 sm:$0xff]  }
 0x233   :  { %1990 = vmatpush1.bf16.msra.mxu0 %v3756_v2  ;;  %2072 = vmatpush1.bf16.msra.mxu1 %v3759_v3  ;;  %v3845_v2 = vld [vmem:[#allocation4 + $0x101c] ss:$68 sps:$4 sm:$0xff]   ;;  %v3840_v3 = vld [vmem:[#allocation4 + $0x1010] ss:$68 sps:$4 sm:$0xff]  }
 0x234   :  { %2021 = vmatprep.mubr.bf16.mxu0 %v1156_v7  ;;  %2103 = vmatprep.mubr.bf16.mxu1 %v1156_v7  ;;  %v3851_v7 = vld [vmem:[#allocation4 + $0x10a4] ss:$68 sps:$4 sm:$0xff]  }
 0x235   :  { %1991 = vmatprep.subr.bf16.mxu0 %v3764_v5  ;;  %2073 = vmatprep.subr.bf16.mxu1 %v3767_v6  ;;  %v3428_v5 = vadd.f32 %v4181_v52, %v336_v0  ;;  %v3848_v6 = vld [vmem:[#allocation4 + $0x109c] ss:$68 sps:$4 sm:$0xff]   ;;  %v3969_v0 = vld [vmem:[#allocation4 + $0x3f0] ss:$68 sps:$4 sm:$0xff]  }
 0x236   :  { %v3855_v52 = vld [vmem:[#allocation4 + $0xb8] ss:$68 sps:$4 sm:$0xff]  }
 0x237   :  { %1992 = vmatpush1.bf16.msra.mxu0 %v3762_v8  ;;  %2074 = vmatpush1.bf16.msra.mxu1 %v3765_v9  ;;  %v3846_v8 = vld [vmem:[#allocation4 + $0x1098] ss:$68 sps:$4 sm:$0xff]   ;;  %v3849_v9 = vld [vmem:[#allocation4 + $0x10a0] ss:$68 sps:$4 sm:$0xff]  }
 0x238   :  { %1993 = vmatprep.subr.bf16.mxu0 %v3770_v14  ;;  %2075 = vmatprep.subr.bf16.mxu1 %v3773_v15  ;;  %v1151_v14 = vmax.f32 %v3428_v5, 0.0  ;;  %v3852_v15 = vld [vmem:[#allocation4 + $0x30] ss:$68 sps:$4 sm:$0xff]  }
 0x239   :  { %v3980_v5 = vld [vmem:[#allocation4 + $0x58c] ss:$68 sps:$4 sm:$0xff]  }
 0x23b   :  { %1994 = vmatpush1.bf16.msra.mxu0 %v3768_v16  ;;  %2076 = vmatpush1.bf16.msra.mxu1 %v3771_v17  ;;  %v1155_v16 = vpack.c.bf16 %v1151_v14, %v1151_v14  ;;  %v3857_v17 = vld [vmem:[#allocation4 + $0xbc] ss:$68 sps:$4 sm:$0xff]  }
 0x23c   :  { %1995 = vmatprep.subr.bf16.mxu0 %v3776_v18  ;;  %2077 = vmatprep.subr.bf16.mxu1 %v3779_v19  ;;  %v3860_v18 = vld [vmem:[#allocation4 + $0x144] ss:$68 sps:$4 sm:$0xff]   ;;  %v3984_v14 = vld [vmem:[#allocation4 + $0x698] ss:$68 sps:$4 sm:$0xff]  }
 0x23d   :  { %v3858_v19 = vld [vmem:[#allocation4 + $0x140] ss:$68 sps:$4 sm:$0xff]  }
 0x23f   :  { %1996 = vmatpush1.bf16.msra.mxu0 %v3774_v20  ;;  %2078 = vmatpush1.bf16.msra.mxu1 %v3777_v22  ;;  %v3863_v20 = vld [vmem:[#allocation4 + $0x1cc] ss:$68 sps:$4 sm:$0xff]  }
 0x240   :  { %1997 = vmatprep.subr.bf16.mxu0 %v3782_v23  ;;  %2079 = vmatprep.subr.bf16.mxu1 %v3785_v24  ;;  %v3861_v22 = vld [vmem:[#allocation4 + $0x1c8] ss:$68 sps:$4 sm:$0xff]   ;;  %v3866_v23 = vld [vmem:[#allocation4 + $0x254] ss:$68 sps:$4 sm:$0xff]  }
 0x241   :  { %v3864_v24 = vld [vmem:[#allocation4 + $0x250] ss:$68 sps:$4 sm:$0xff]  }
 0x243   :  { %1998 = vmatpush1.bf16.msra.mxu0 %v3780_v25  ;;  %2080 = vmatpush1.bf16.msra.mxu1 %v3783_v27  ;;  %v3869_v25 = vld [vmem:[#allocation4 + $0x2dc] ss:$68 sps:$4 sm:$0xff]  }
 0x244   :  { %1999 = vmatprep.subr.bf16.mxu0 %v3788_v28  ;;  %2081 = vmatprep.subr.bf16.mxu1 %v3791_v29  ;;  %v3867_v27 = vld [vmem:[#allocation4 + $0x2d8] ss:$68 sps:$4 sm:$0xff]   ;;  %v3872_v28 = vld [vmem:[#allocation4 + $0x364] ss:$68 sps:$4 sm:$0xff]  }
 0x245   :  { %v3870_v29 = vld [vmem:[#allocation4 + $0x360] ss:$68 sps:$4 sm:$0xff]  }
 0x247   :  { %2000 = vmatpush1.bf16.msra.mxu0 %v3786_v30  ;;  %2082 = vmatpush1.bf16.msra.mxu1 %v3789_v31  ;;  %v3875_v30 = vld [vmem:[#allocation4 + $0x3ec] ss:$68 sps:$4 sm:$0xff]  }
 0x248   :  { %2001 = vmatprep.subr.bf16.mxu0 %v3794_v33  ;;  %2083 = vmatprep.subr.bf16.mxu1 %v3797_v34  ;;  %v3873_v31 = vld [vmem:[#allocation4 + $0x3e8] ss:$68 sps:$4 sm:$0xff]   ;;  %v3878_v33 = vld [vmem:[#allocation4 + $0x474] ss:$68 sps:$4 sm:$0xff]  }
 0x249   :  { %v3876_v34 = vld [vmem:[#allocation4 + $0x470] ss:$68 sps:$4 sm:$0xff]  }
 0x24b   :  { %2002 = vmatpush1.bf16.msra.mxu0 %v3792_v35  ;;  %2084 = vmatpush1.bf16.msra.mxu1 %v3795_v36  ;;  %v3881_v35 = vld [vmem:[#allocation4 + $0x4fc] ss:$68 sps:$4 sm:$0xff]  }
 0x24c   :  { %2003 = vmatprep.subr.bf16.mxu0 %v3800_v10  ;;  %2085 = vmatprep.subr.bf16.mxu1 %v3803_v37  ;;  %v3879_v36 = vld [vmem:[#allocation4 + $0x4f8] ss:$68 sps:$4 sm:$0xff]   ;;  %v3884_v10 = vld [vmem:[#allocation4 + $0x584] ss:$68 sps:$4 sm:$0xff]  }
 0x24d   :  { %v3882_v37 = vld [vmem:[#allocation4 + $0x580] ss:$68 sps:$4 sm:$0xff]  }
 0x24f   :  { %2004 = vmatpush1.bf16.msra.mxu0 %v3798_v38  ;;  %2086 = vmatpush1.bf16.msra.mxu1 %v3801_v39  ;;  %v3887_v38 = vld [vmem:[#allocation4 + $0x60c] ss:$68 sps:$4 sm:$0xff]  }
 0x250   :  { %2005 = vmatprep.subr.bf16.mxu0 %v3806_v40  ;;  %2087 = vmatprep.subr.bf16.mxu1 %v3809_v41  ;;  %v3885_v39 = vld [vmem:[#allocation4 + $0x608] ss:$68 sps:$4 sm:$0xff]   ;;  %v3890_v40 = vld [vmem:[#allocation4 + $0x694] ss:$68 sps:$4 sm:$0xff]  }
 0x251   :  { %v3888_v41 = vld [vmem:[#allocation4 + $0x690] ss:$68 sps:$4 sm:$0xff]  }
 0x253   :  { %2006 = vmatpush1.bf16.msra.mxu0 %v3804_v12  ;;  %2088 = vmatpush1.bf16.msra.mxu1 %v3807_v42  ;;  %v3893_v12 = vld [vmem:[#allocation4 + $0x71c] ss:$68 sps:$4 sm:$0xff]  }
 0x254   :  { %2007 = vmatprep.subr.bf16.mxu0 %v3812_v43  ;;  %2089 = vmatprep.subr.bf16.mxu1 %v3815_v44  ;;  %v3891_v42 = vld [vmem:[#allocation4 + $0x718] ss:$68 sps:$4 sm:$0xff]   ;;  %v3896_v43 = vld [vmem:[#allocation4 + $0x7a4] ss:$68 sps:$4 sm:$0xff]  }
 0x255   :  { %v3894_v44 = vld [vmem:[#allocation4 + $0x7a0] ss:$68 sps:$4 sm:$0xff]  }
 0x257   :  { %2008 = vmatpush1.bf16.msra.mxu0 %v3810_v45  ;;  %2090 = vmatpush1.bf16.msra.mxu1 %v3813_v32  ;;  %v3899_v45 = vld [vmem:[#allocation4 + $0x82c] ss:$68 sps:$4 sm:$0xff]  }
 0x258   :  { %2009 = vmatprep.subr.bf16.mxu0 %v3818_v46  ;;  %2091 = vmatprep.subr.bf16.mxu1 %v3821_v48  ;;  %v3897_v32 = vld [vmem:[#allocation4 + $0x828] ss:$68 sps:$4 sm:$0xff]   ;;  %v3902_v46 = vld [vmem:[#allocation4 + $0x8b4] ss:$68 sps:$4 sm:$0xff]  }
 0x259   :  { %v3948_v48 = vld [vmem:[#allocation4 + $0x38] ss:$68 sps:$4 sm:$0xff]  }
 0x25b   :  { %2010 = vmatpush1.bf16.msra.mxu0 %v3816_v49  ;;  %2092 = vmatpush1.bf16.msra.mxu1 %v3819_v50  ;;  %v3950_v49 = vld [vmem:[#allocation4 + $0x3c] ss:$68 sps:$4 sm:$0xff]   ;;  %v3953_v50 = vld [vmem:[#allocation4 + $0xc4] ss:$68 sps:$4 sm:$0xff]  }
 0x25c   :  { %2011 = vmatprep.subr.bf16.mxu0 %v3824_v51  ;;  %2093 = vmatprep.subr.bf16.mxu1 %v3827_v53  ;;  %v3951_v51 = vld [vmem:[#allocation4 + $0xc0] ss:$68 sps:$4 sm:$0xff]   ;;  %v3956_v53 = vld [vmem:[#allocation4 + $0x14c] ss:$68 sps:$4 sm:$0xff]  }
 0x25f   :  { %2012 = vmatpush1.bf16.msra.mxu0 %v3822_v54  ;;  %2094 = vmatpush1.bf16.msra.mxu1 %v3825_v55  ;;  %v3954_v54 = vld [vmem:[#allocation4 + $0x148] ss:$68 sps:$4 sm:$0xff]   ;;  %v3959_v55 = vld [vmem:[#allocation4 + $0x1d4] ss:$68 sps:$4 sm:$0xff]  }
 0x260   :  { %2013 = vmatprep.subr.bf16.mxu0 %v3830_v56  ;;  %2095 = vmatprep.subr.bf16.mxu1 %v3833_v57  ;;  %v3957_v56 = vld [vmem:[#allocation4 + $0x1d0] ss:$68 sps:$4 sm:$0xff]   ;;  %v3962_v57 = vld [vmem:[#allocation4 + $0x25c] ss:$68 sps:$4 sm:$0xff]  }
 0x263   :  { %2014 = vmatpush1.bf16.msra.mxu0 %v3828_v58  ;;  %2096 = vmatpush1.bf16.msra.mxu1 %v3831_v59  ;;  %v3960_v58 = vld [vmem:[#allocation4 + $0x258] ss:$68 sps:$4 sm:$0xff]   ;;  %v3965_v59 = vld [vmem:[#allocation4 + $0x2e4] ss:$68 sps:$4 sm:$0xff]  }
 0x264   :  { %2015 = vmatprep.subr.bf16.mxu0 %v3836_v60  ;;  %2097 = vmatprep.subr.bf16.mxu1 %v3839_v61  ;;  %v3963_v60 = vld [vmem:[#allocation4 + $0x2e0] ss:$68 sps:$4 sm:$0xff]   ;;  %v3968_v61 = vld [vmem:[#allocation4 + $0x36c] ss:$68 sps:$4 sm:$0xff]  }
 0x267   :  { %2016 = vmatpush1.bf16.msra.mxu0 %v3834_v62  ;;  %2098 = vmatpush1.bf16.msra.mxu1 %v3837_v63  ;;  %v3966_v62 = vld [vmem:[#allocation4 + $0x368] ss:$68 sps:$4 sm:$0xff]   ;;  %v3971_v63 = vld [vmem:[#allocation4 + $0x3f4] ss:$68 sps:$4 sm:$0xff]  }
 0x268   :  { %2017 = vmatprep.subr.bf16.mxu0 %v3842_v1  ;;  %2099 = vmatprep.subr.bf16.mxu1 %v3845_v2  ;;  %v3974_v1 = vld [vmem:[#allocation4 + $0x47c] ss:$68 sps:$4 sm:$0xff]  }
 0x269   :  { %v3972_v2 = vld [vmem:[#allocation4 + $0x478] ss:$68 sps:$4 sm:$0xff]  }
 0x26b   :  { %2018 = vmatpush1.bf16.msra.mxu0 %v3840_v3  ;;  %2100 = vmatpush1.bf16.msra.mxu1 %v3843_v4  ;;  %v3977_v3 = vld [vmem:[#allocation4 + $0x504] ss:$68 sps:$4 sm:$0xff]  }
 0x26c   :  { %2019 = vmatprep.subr.bf16.mxu0 %v3848_v6  ;;  %2101 = vmatprep.subr.bf16.mxu1 %v3851_v7  ;;  %v3975_v4 = vld [vmem:[#allocation4 + $0x500] ss:$68 sps:$4 sm:$0xff]   ;;  %v3978_v6 = vld [vmem:[#allocation4 + $0x588] ss:$68 sps:$4 sm:$0xff]   ;;  %v3983_v7 = vld [vmem:[#allocation4 + $0x614] ss:$68 sps:$4 sm:$0xff]  }
 0x26f   :  { %2020 = vmatpush1.bf16.msra.mxu0 %v3846_v8  ;;  %2102 = vmatpush1.bf16.msra.mxu1 %v3849_v9  ;;  %v3981_v8 = vld [vmem:[#allocation4 + $0x610] ss:$68 sps:$4 sm:$0xff]   ;;  %v3986_v9 = vld [vmem:[#allocation4 + $0x69c] ss:$68 sps:$4 sm:$0xff]  }
 0x270   :  { %2517 = vmatprep.subr.bf16.mxu0 %v3854_v47  ;;  %2808 = vmatprep.subr.bf16.mxu1 %v3950_v49  ;;  %v3989_v47 = vld [vmem:[#allocation4 + $0x724] ss:$68 sps:$4 sm:$0xff]   ;;  %v3923_v49 = vld [vmem:[#allocation4 + $0xc6c] ss:$68 sps:$4 sm:$0xff]  }
 0x272   :  { %2022 = vmatmul.mubr.bf16.vlgmr.msra.gmra.mrb[4].mxu0 %v1155_v16  ;;  %2104 = vmatmul.mubr.bf16.vlgmr.msra.gmra.mrb[12].mxu1 %v1155_v16  ;;  %v3987_v16 = vld [vmem:[#allocation4 + $0x720] ss:$68 sps:$4 sm:$0xff]  }
 0x273   :  { %2518 = vmatpush1.bf16.msra.mxu0 %v3852_v15  ;;  %2809 = vmatpush1.bf16.msra.mxu1 %v3948_v48  ;;  %v4186_v15 = vld [vmem:[#allocation6 + $0x2] ss:$8 sm:$0xf] }
 0x274   :  { %2519 = vmatprep.subr.bf16.mxu0 %v3857_v17  ;;  %2810 = vmatprep.subr.bf16.mxu1 %v3953_v50  ;;  %v1291_v17 = vrot.slane %v4186_v15, %v4149_v11  ;;  %v3918_v48 = vld [vmem:[#allocation4 + $0xbe0] ss:$68 sps:$4 sm:$0xff]   ;;  %v3921_v50 = vld [vmem:[#allocation4 + $0xc68] ss:$68 sps:$4 sm:$0xff]  }
 0x277   :  { %2520 = vmatpush1.bf16.msra.mxu0 %v3855_v52  ;;  %2811 = vmatpush1.bf16.msra.mxu1 %v3951_v51  ;;  %v1295_v52 = vrot.slane %v4186_v15, %v4154_v13  ;;  %v3926_v51 = vld [vmem:[#allocation4 + $0xcf4] ss:$68 sps:$4 sm:$0xff]  }
 0x278   :  { %2521 = vmatprep.subr.bf16.mxu0 %v3860_v18  ;;  %2812 = vmatprep.subr.bf16.mxu1 %v3956_v53  ;;  %v1303_v18 = vrot.slane %v4186_v15, %v4161_v21  ;;  %v3905_v21 = vld [vmem:[#allocation4 + $0x93c] ss:$68 sps:$4 sm:$0xff]   ;;  %v3924_v53 = vld [vmem:[#allocation4 + $0xcf0] ss:$68 sps:$4 sm:$0xff]  }
 0x27b   :  { %2522 = vmatpush1.bf16.msra.mxu0 %v3858_v19  ;;  %2813 = vmatpush1.bf16.msra.mxu1 %v3954_v54  ;;  %v3929_v54 = vld [vmem:[#allocation4 + $0xd7c] ss:$68 sps:$4 sm:$0xff]  }
 0x27c   :  { %2523 = vmatprep.subr.bf16.mxu0 %v3863_v20  ;;  %2814 = vmatprep.subr.bf16.mxu1 %v3959_v55  ;;  %v3927_v55 = vld [vmem:[#allocation4 + $0xd78] ss:$68 sps:$4 sm:$0xff]  }
 0x27f   :  { %2524 = vmatpush1.bf16.msra.mxu0 %v3861_v22  ;;  %2815 = vmatpush1.bf16.msra.mxu1 %v3957_v56  ;;  %v3932_v56 = vld [vmem:[#allocation4 + $0xe04] ss:$68 sps:$4 sm:$0xff]  }
 0x280   :  { %2525 = vmatprep.subr.bf16.mxu0 %v3866_v23  ;;  %2816 = vmatprep.subr.bf16.mxu1 %v3962_v57  ;;  %v3930_v57 = vld [vmem:[#allocation4 + $0xe00] ss:$68 sps:$4 sm:$0xff]  }
 0x283   :  { %2526 = vmatpush1.bf16.msra.mxu0 %v3864_v24  ;;  %2817 = vmatpush1.bf16.msra.mxu1 %v3960_v58  ;;  %v3935_v58 = vld [vmem:[#allocation4 + $0xe8c] ss:$68 sps:$4 sm:$0xff]  }
 0x284   :  { %2527 = vmatprep.subr.bf16.mxu0 %v3869_v25  ;;  %2818 = vmatprep.subr.bf16.mxu1 %v3965_v59  ;;  %v3933_v59 = vld [vmem:[#allocation4 + $0xe88] ss:$68 sps:$4 sm:$0xff]  }
 0x287   :  { %2528 = vmatpush1.bf16.msra.mxu0 %v3867_v27  ;;  %2819 = vmatpush1.bf16.msra.mxu1 %v3963_v60  ;;  %v3938_v60 = vld [vmem:[#allocation4 + $0xf14] ss:$68 sps:$4 sm:$0xff]  }
 0x288   :  { %2529 = vmatprep.subr.bf16.mxu0 %v3872_v28  ;;  %2820 = vmatprep.subr.bf16.mxu1 %v3968_v61  ;;  %v3936_v61 = vld [vmem:[#allocation4 + $0xf10] ss:$68 sps:$4 sm:$0xff]  }
 0x28b   :  { %2530 = vmatpush1.bf16.msra.mxu0 %v3870_v29  ;;  %2821 = vmatpush1.bf16.msra.mxu1 %v3966_v62  ;;  %v3941_v62 = vld [vmem:[#allocation4 + $0xf9c] ss:$68 sps:$4 sm:$0xff]  }
 0x28c   :  { %2531 = vmatprep.subr.bf16.mxu0 %v3875_v30  ;;  %2822 = vmatprep.subr.bf16.mxu1 %v3971_v63  ;;  %v3939_v63 = vld [vmem:[#allocation4 + $0xf98] ss:$68 sps:$4 sm:$0xff]  }
 0x28f   :  { %2532 = vmatpush1.bf16.msra.mxu0 %v3873_v31  ;;  %2823 = vmatpush1.bf16.msra.mxu1 %v3969_v0  ;;  %v1299_v0 = vrot.slane %v4186_v15, %v4168_v26  ;;  %v3995_v26 = vld [vmem:[#allocation4 + $0x834] ss:$68 sps:$4 sm:$0xff]   ;;  %v2185_v15 = vld [vmem:[#allocation6 + $0x3] ss:$8 sm:$0x3] }
 0x290   :  { %2533 = vmatprep.subr.bf16.mxu0 %v3878_v33  ;;  %2824 = vmatprep.subr.bf16.mxu1 %v3974_v1  ;;  %v3944_v1 = vld [vmem:[#allocation4 + $0x1024] ss:$68 sps:$4 sm:$0xff]  }
 0x293   :  { %2534 = vmatpush1.bf16.msra.mxu0 %v3876_v34  ;;  %2825 = vmatpush1.bf16.msra.mxu1 %v3972_v2  ;;  %v3942_v2 = vld [vmem:[#allocation4 + $0x1020] ss:$68 sps:$4 sm:$0xff]  }
 0x294   :  { %2535 = vmatprep.subr.bf16.mxu0 %v3881_v35  ;;  %2826 = vmatprep.subr.bf16.mxu1 %v3977_v3 }
 0x297   :  { %2536 = vmatpush1.bf16.msra.mxu0 %v3879_v36  ;;  %2827 = vmatpush1.bf16.msra.mxu1 %v3975_v4  ;;  %v3947_v4 = vld [vmem:[#allocation4 + $0x10ac] ss:$68 sps:$4 sm:$0xff]  }
 0x298   :  { %2537 = vmatprep.subr.bf16.mxu0 %v3884_v10  ;;  %2828 = vmatprep.subr.bf16.mxu1 %v3980_v5  ;;  %v3900_v10 = vld [vmem:[#allocation4 + $0x8b0] ss:$68 sps:$4 sm:$0xff]   ;;  %v3945_v5 = vld [vmem:[#allocation4 + $0x10a8] ss:$68 sps:$4 sm:$0xff]  }
 0x29b   :  { %2538 = vmatpush1.bf16.msra.mxu0 %v3882_v37  ;;  %2829 = vmatpush1.bf16.msra.mxu1 %v3978_v6 }
 0x29c   :  { %2539 = vmatprep.subr.bf16.mxu0 %v3887_v38  ;;  %2830 = vmatprep.subr.bf16.mxu1 %v3983_v7 }
 0x29f   :  { %2540 = vmatpush1.bf16.msra.mxu0 %v3885_v39  ;;  %2831 = vmatpush1.bf16.msra.mxu1 %v3981_v8  ;;  %v3903_v39 = vld [vmem:[#allocation4 + $0x938] ss:$68 sps:$4 sm:$0xff]   ;;  %v3992_v8 = vld [vmem:[#allocation4 + $0x7ac] ss:$68 sps:$4 sm:$0xff]  }
 0x2a0   :  { %2541 = vmatprep.subr.bf16.mxu0 %v3890_v40  ;;  %2832 = vmatprep.subr.bf16.mxu1 %v3986_v9  ;;  %v3908_v40 = vld [vmem:[#allocation4 + $0x9c4] ss:$68 sps:$4 sm:$0xff]  }
 0x2a1   :  { %v3990_v9 = vld [vmem:[#allocation4 + $0x7a8] ss:$68 sps:$4 sm:$0xff]  }
 0x2a3   :  { %2542 = vmatpush1.bf16.msra.mxu0 %v3888_v41  ;;  %2833 = vmatpush1.bf16.msra.mxu1 %v3984_v14  ;;  %v3906_v41 = vld [vmem:[#allocation4 + $0x9c0] ss:$68 sps:$4 sm:$0xff]   ;;  %v3993_v14 = vld [vmem:[#allocation4 + $0x830] ss:$68 sps:$4 sm:$0xff]  }
 0x2a4   :  { %2543 = vmatprep.subr.bf16.mxu0 %v3893_v12  ;;  %2834 = vmatprep.subr.bf16.mxu1 %v3989_v47  ;;  %v3911_v12 = vld [vmem:[#allocation4 + $0xa4c] ss:$68 sps:$4 sm:$0xff]   ;;  %v3996_v47 = vld [vmem:[#allocation4 + $0x480] ss:$68 sps:$4 sm:$0xff]  }
 0x2a7   :  { %2544 = vmatpush1.bf16.msra.mxu0 %v3891_v42  ;;  %2835 = vmatpush1.bf16.msra.mxu1 %v3987_v16  ;;  %v3909_v42 = vld [vmem:[#allocation4 + $0xa48] ss:$68 sps:$4 sm:$0xff]   ;;  %v2190_v16 = vrot.slane %v2185_v15, %v4149_v11 }
 0x2a8   :  { %2545 = vmatprep.subr.bf16.mxu0 %v3896_v43  ;;  %v3914_v43 = vld [vmem:[#allocation4 + $0xad4] ss:$68 sps:$4 sm:$0xff]   ;;  %2836 = vmatprep.subr.bf16.mxu1 %v3992_v8 }
 0x2ab   :  { %2546 = vmatpush1.bf16.msra.mxu0 %v3894_v44  ;;  %v3912_v44 = vld [vmem:[#allocation4 + $0xad0] ss:$68 sps:$4 sm:$0xff]   ;;  %2837 = vmatpush1.bf16.msra.mxu1 %v3990_v9 }
 0x2ac   :  { %2547 = vmatprep.subr.bf16.mxu0 %v3899_v45  ;;  %v3917_v45 = vld [vmem:[#allocation4 + $0xb5c] ss:$68 sps:$4 sm:$0xff]   ;;  %2838 = vmatprep.subr.bf16.mxu1 %v3995_v26 }
 0x2af   :  { %2548 = vmatpush1.bf16.msra.mxu0 %v3897_v32  ;;  %v3915_v32 = vld [vmem:[#allocation4 + $0xb58] ss:$68 sps:$4 sm:$0xff]   ;;  %2839 = vmatpush1.bf16.msra.mxu1 %v3993_v14 }
 0x2b0   :  { %2558 = vmatprep.subr.bf16.mxu0 %v3902_v46  ;;  %v3920_v46 = vld [vmem:[#allocation4 + $0xbe4] ss:$68 sps:$4 sm:$0xff]   ;;  %3404 = vmatprep.subr.bf16.mxu1 %v3996_v47 }
 0x345   :  { %v2023_v19 = vpop.f32.mrb[4].mxu0  ;;  %v4194_v20 = vpop.f32.mrb[12].mxu1 }
 0x346   :  { %v3430_v22 = vadd.f32 %v2023_v19, %v1291_v17  ;;  %v2025_v23 = vpop.f32.mrb[5].mxu0  ;;  %v2107_v24 = vpop.f32.mrb[13].mxu1  ;;  %v3432_v3 = vadd.f32 %v4194_v20, %v1299_v0  ;;  %v2194_v17 = vrot.slane %v2185_v15, %v4154_v13 }
 0x347   :  { %v3431_v25 = vadd.f32 %v2025_v23, %v1295_v52  ;;  %v3433_v27 = vadd.f32 %v2107_v24, %v1303_v18  ;;  %v2027_v28 = vpop.f32.mrb[6].mxu0  ;;  %v2109_v29 = vpop.f32.mrb[14].mxu1 }
 0x348   :  { %v2112_v30 = vmax.f32 %v3430_v22, 0.0  ;;  %v2028_v31 = vpop.f32.mrb[7].mxu0  ;;  %v2110_v33 = vpop.f32.mrb[15].mxu1  ;;  %v2114_v6 = vmax.f32 %v3432_v3, 0.0  ;;  %v3997_v28 = vld [vmem:[#allocation4 + $0x40] ss:$68 sps:$4 sm:$0xff]  }
 0x349   :  { %v2113_v34 = vmax.f32 %v3431_v25, 0.0  ;;  %v2115_v35 = vmax.f32 %v3433_v27, 0.0  ;;  %v3999_v31 = vld [vmem:[#allocation4 + $0xc8] ss:$68 sps:$4 sm:$0xff]   ;;  %v4000_v33 = vld [vmem:[#allocation4 + $0x590] ss:$68 sps:$4 sm:$0xff]  }
 0x34a   :  { %v2116_v37 = vpack.c.bf16 %v2112_v30, %v2112_v30  ;;  %v2118_v7 = vpack.c.bf16 %v2114_v6, %v2114_v6  ;;  %v3998_v30 = vld [vmem:[#allocation4 + $0x508] ss:$68 sps:$4 sm:$0xff]  }
 0x34b   :  { %v2117_v36 = vpack.c.bf16 %v2113_v34, %v2113_v34  ;;  %v2119_v38 = vpack.c.bf16 %v2115_v35, %v2115_v35  ;;  %v4001_v34 = vld [vmem:[#allocation4 + $0x150] ss:$68 sps:$4 sm:$0xff]   ;;  %v4002_v35 = vld [vmem:[#allocation4 + $0x618] ss:$68 sps:$4 sm:$0xff]  }
 0x34d   :  { %2549 = vmatprep.mubr.bf16.mxu0 %v2117_v36  ;;  %v4003_v36 = vld [vmem:[#allocation4 + $0x1d8] ss:$68 sps:$4 sm:$0xff]  }
 0x34e   :  { %2550 = vmatmul.mubr.bf16.vlgmr.msra.gmra.mrb[8].mxu0 %v2116_v37  ;;  %v4005_v37 = vld [vmem:[#allocation4 + $0x260] ss:$68 sps:$4 sm:$0xff]  }
 0x34f   :  { %2559 = vmatpush1.bf16.msra.mxu0 %v3900_v10  ;;  %2590 = vmatprep.mubr.bf16.mxu0 %v2119_v38  ;;  %v4004_v10 = vld [vmem:[#allocation4 + $0x6a0] ss:$68 sps:$4 sm:$0xff]   ;;  %v4007_v38 = vld [vmem:[#allocation4 + $0x2e8] ss:$68 sps:$4 sm:$0xff]  }
 0x350   :  { %2560 = vmatprep.subr.bf16.mxu0 %v3905_v21  ;;  %v4006_v21 = vld [vmem:[#allocation4 + $0x728] ss:$68 sps:$4 sm:$0xff]  }
 0x353   :  { %2561 = vmatpush1.bf16.msra.mxu0 %v3903_v39  ;;  %v4008_v39 = vld [vmem:[#allocation4 + $0x7b0] ss:$68 sps:$4 sm:$0xff]  }
 0x354   :  { %2562 = vmatprep.subr.bf16.mxu0 %v3908_v40  ;;  %v4009_v40 = vld [vmem:[#allocation4 + $0x370] ss:$68 sps:$4 sm:$0xff]  }
 0x357   :  { %2563 = vmatpush1.bf16.msra.mxu0 %v3906_v41  ;;  %v4010_v41 = vld [vmem:[#allocation4 + $0x838] ss:$68 sps:$4 sm:$0xff]  }
 0x358   :  { %2564 = vmatprep.subr.bf16.mxu0 %v3911_v12  ;;  %v4011_v12 = vld [vmem:[#allocation4 + $0x3f8] ss:$68 sps:$4 sm:$0xff]  }
 0x35b   :  { %2565 = vmatpush1.bf16.msra.mxu0 %v3909_v42  ;;  %v2636_v42 = vld [vmem:[#allocation6 + $0x4] ss:$8 sm:$0x3] }
 0x35c   :  { %2566 = vmatprep.subr.bf16.mxu0 %v3914_v43  ;;  %v2641_v43 = vrot.slane %v2636_v42, %v4149_v11 }
 0x35f   :  { %2567 = vmatpush1.bf16.msra.mxu0 %v3912_v44  ;;  %v2645_v44 = vrot.slane %v2636_v42, %v4154_v13 }
 0x360   :  { %2568 = vmatprep.subr.bf16.mxu0 %v3917_v45 }
 0x363   :  { %2569 = vmatpush1.bf16.msra.mxu0 %v3915_v32 }
 0x364   :  { %2570 = vmatprep.subr.bf16.mxu0 %v3920_v46 }
 0x367   :  { %2571 = vmatpush1.bf16.msra.mxu0 %v3918_v48 }
 0x368   :  { %2572 = vmatprep.subr.bf16.mxu0 %v3923_v49 }
 0x36b   :  { %2573 = vmatpush1.bf16.msra.mxu0 %v3921_v50 }
 0x36c   :  { %2574 = vmatprep.subr.bf16.mxu0 %v3926_v51 }
 0x36f   :  { %2575 = vmatpush1.bf16.msra.mxu0 %v3924_v53 }
 0x370   :  { %2576 = vmatprep.subr.bf16.mxu0 %v3929_v54 }
 0x373   :  { %2577 = vmatpush1.bf16.msra.mxu0 %v3927_v55 }
 0x374   :  { %2578 = vmatprep.subr.bf16.mxu0 %v3932_v56 }
 0x377   :  { %2579 = vmatpush1.bf16.msra.mxu0 %v3930_v57  ;;  %v2885_v57 = vld [vmem:[#allocation6 + $0x5] ss:$0 sm:$0xff] }
 0x378   :  { %2580 = vmatprep.subr.bf16.mxu0 %v3935_v58 }
 0x37b   :  { %2581 = vmatpush1.bf16.msra.mxu0 %v3933_v59 }
 0x37c   :  { %2582 = vmatprep.subr.bf16.mxu0 %v3938_v60 }
 0x37f   :  { %2583 = vmatpush1.bf16.msra.mxu0 %v3936_v61 }
 0x380   :  { %2584 = vmatprep.subr.bf16.mxu0 %v3941_v62 }
 0x383   :  { %2585 = vmatpush1.bf16.msra.mxu0 %v3939_v63 }
 0x384   :  { %2586 = vmatprep.subr.bf16.mxu0 %v3944_v1 }
 0x387   :  { %2587 = vmatpush1.bf16.msra.mxu0 %v3942_v2 }
 0x388   :  { %2588 = vmatprep.subr.bf16.mxu0 %v3947_v4 }
 0x38b   :  { %2589 = vmatpush1.bf16.msra.mxu0 %v3945_v5 }
 0x38e   :  { %2591 = vmatmul.mubr.bf16.vlgmr.msra.gmra.mrb[8].mxu0 %v2118_v7 }
 0x461   :  { %v2592_v52 = vpop.f32.mrb[8].mxu0 }
 0x462   :  { %v3434_v18 = vadd.f32 %v2592_v52, %v2190_v16  ;;  %v2594_v19 = vpop.f32.mrb[9].mxu0 }
 0x463   :  { %v3435_v20 = vadd.f32 %v2594_v19, %v2194_v17  ;;  %v2596_v22 = vpop.f32.mrb[10].mxu0 }
 0x464   :  { %v2599_v23 = vmax.f32 %v3434_v18, 0.0  ;;  %v2597_v24 = vpop.f32.mrb[11].mxu0 }
 0x465   :  { %v2600_v25 = vmax.f32 %v3435_v20, 0.0 }
 0x466   :  { %v2601_v29 = vpack.c.bf16 %v2599_v23, %v2599_v23 }
 0x467   :  { %v2602_v27 = vpack.c.bf16 %v2600_v25, %v2600_v25 }
 0x469   :  { %2840 = vmatprep.mubr.bf16.mxu1 %v2602_v27 }
 0x46a   :  { %2841 = vmatmul.mubr.bf16.vlgmr.msra.gmra.mrb[16].mxu1 %v2601_v29 }
 0x46b   :  { %3405 = vmatpush3.bf16.msra.mxu1 %v3997_v28 }
 0x46c   :  { %3406 = vmatprep.subr.bf16.mxu1 %v3998_v30 }
 0x46f   :  { %3407 = vmatpush3.bf16.msra.mxu1 %v3999_v31 }
 0x470   :  { %3408 = vmatprep.subr.bf16.mxu1 %v4000_v33 }
 0x473   :  { %3409 = vmatpush3.bf16.msra.mxu1 %v4001_v34 }
 0x474   :  { %3410 = vmatprep.subr.bf16.mxu1 %v4002_v35 }
 0x477   :  { %3411 = vmatpush3.bf16.msra.mxu1 %v4003_v36 }
 0x478   :  { %3412 = vmatprep.subr.bf16.mxu1 %v4004_v10 }
 0x47b   :  { %3413 = vmatpush3.bf16.msra.mxu1 %v4005_v37 }
 0x47c   :  { %3414 = vmatprep.subr.bf16.mxu1 %v4006_v21 }
 0x47f   :  { %3415 = vmatpush3.bf16.msra.mxu1 %v4007_v38 }
 0x480   :  { %3416 = vmatprep.subr.bf16.mxu1 %v4008_v39 }
 0x483   :  { %3417 = vmatpush3.bf16.msra.mxu1 %v4009_v40 }
 0x484   :  { %3418 = vmatprep.subr.bf16.mxu1 %v4010_v41 }
 0x487   :  { %3419 = vmatpush3.bf16.msra.mxu1 %v4011_v12 }
 0x53d   :  { %v2842_v45 = vpop.f32.mrb[16].mxu1 }
 0x53e   :  { %v2843_v32 = vadd.f32 %v2842_v45, %v2641_v43  ;;  %v2844_v46 = vpop.f32.mrb[17].mxu1 }
 0x53f   :  { %v2845_v48 = vadd.f32 %v2844_v46, %v2645_v44  ;;  %v2846_v49 = vpop.f32.mrb[18].mxu1 }
 0x540   :  { %v2849_v50 = vmax.f32 %v2843_v32, 0.0  ;;  %v2847_v51 = vpop.f32.mrb[19].mxu1 }
 0x541   :  { %v2850_v53 = vmax.f32 %v2845_v48, 0.0 }
 0x542   :  { %v2851_v55 = vpack.c.bf16 %v2849_v50, %v2849_v50 }
 0x543   :  { %v2852_v54 = vpack.c.bf16 %v2850_v53, %v2850_v53 }
 0x545   :  { %3014 = vmatprep.mubr.bf16.mxu1 %v2852_v54 }
 0x546   :  { %3015 = vmatmul.mubr.bf16.vlgmr.msra.gmra.mrb[20].mxu1 %v2851_v55 }
 0x619   :  { %v3420_v56 = vpop.f32.mrb[20].mxu1 }
 0x61a   :  { %v3421_v58 = vpop.f32.mrb[21].mxu1 }
 0x61b   :  { %v3422_v59 = vadd.f32 %v3421_v58, %v3420_v56  ;;  %v3423_v60 = vpop.f32.mrb[22].mxu1 }
 0x61c   :  { %v3424_v11 = vpop.f32.mrb[23].mxu1 }
 0x61d   :  { %v3017_v13 = vadd.f32 %v3422_v59, %v2885_v57 }
 0x61f   :  { %3023 = vst.msk [vmem:[%s4209_s3] sm:$0xff] %vm3022_vm1, %v3017_v13 }
 0x620   :  { %3028 = vsyncpa [#allocation3], 1 }
 0x621   :  { %3029 = vsyncpa [#allocation5], 1 }

</bundles_post_ra>
